<compile_context>
chip_gen: v5e
topology: v5e:2x2
jax: 0.10.0
libtpu: 0.0.40
codegen_flags: <defaults>
</compile_context>

<pallas_src>
import functools

import jax
import jax.numpy as jnp
from jax import lax
from jax.experimental import pallas as pl
from jax.experimental.pallas import tpu as pltpu

# ---------------- synthetic config (matches the module's __init__ hyper-params) ----
NUM_USERS = 16
NUM_ITEMS = 16
EMB_DIM = 32
GCN_LAYERS = 2
BATCH = 8
REG_LAMBDA = 1e-4
SSL_LAMBDA = 0.1
TEMPERATURE = 0.2
N_NODES = NUM_USERS + NUM_ITEMS


# ---------------------------------- fused kernel ------------------------------------
def sgl_fused_kernel(uw_ref, iw_ref, g_ref, g1_ref, g2_ref,
                     user_ref, pos_ref, neg_ref, out_ref, *,
                     num_users, num_layers, reg_lambda, ssl_lambda, temperature):
    """Full SGL forward in one kernel (no grid).

    uw_ref  : (U, D) f32   user embedding table
    iw_ref  : (I, D) f32   item embedding table
    g*_ref  : (N, N) f32   normalized adjacencies [graph, sub_graph_1, sub_graph_2]
    user_ref/pos_ref/neg_ref : (B,) i32 in SMEM
    out_ref : (8, 128) f32 -- sublane 0, lanes 0..2 hold [bpr_loss, reg_loss, ssl_loss]
    """
    e0 = jnp.concatenate([uw_ref[...], iw_ref[...]], axis=0)        # (N, D)
    n_nodes, d = e0.shape
    batch = user_ref.shape[0]
    rows = 3 * batch

    # ---- GCN propagation, all 3 views batched along the row axis --------------------
    adj_rows = jnp.concatenate([g_ref[...], g1_ref[...], g2_ref[...]], axis=0)  # (3N, N)

    # layer 1: shared e0 across views -> one (3N,N)@(N,D) matmul
    e_all = jnp.dot(adj_rows, e0, preferred_element_type=jnp.float32)           # (3N, D)
    acc_all = jnp.concatenate([e0, e0, e0], axis=0) + e_all                      # (3N, D)

    # layers 2..L: one (3N,N)@(N,3D) matmul per layer, take diagonal view-blocks
    for _ in range(num_layers - 1):
        e_lane = jnp.concatenate(
            [e_all[0:n_nodes], e_all[n_nodes:2 * n_nodes], e_all[2 * n_nodes:3 * n_nodes]],
            axis=1)                                                              # (N, 3D)
        r = jnp.dot(adj_rows, e_lane, preferred_element_type=jnp.float32)        # (3N, 3D)
        e_all = jnp.concatenate(
            [r[0:n_nodes, 0:d],
             r[n_nodes:2 * n_nodes, d:2 * d],
             r[2 * n_nodes:3 * n_nodes, 2 * d:3 * d]], axis=0)                   # (3N, D)
        acc_all = acc_all + e_all

    e_mean = acc_all * (1.0 / float(num_layers + 1))                             # (3N, D)
    e_full = e_mean[0:n_nodes]                                                   # main graph
    e_v1 = e_mean[n_nodes:2 * n_nodes]                                           # view 1
    e_v2 = e_mean[2 * n_nodes:3 * n_nodes]                                       # view 2

    # ---- one fused gather: (3B, N) one-hot  @  (N, 4D) table  -> (3B, 4D) -----------
    table = jnp.concatenate([e0, e_full, e_v1, e_v2], axis=1)                    # (N, 4D=128)

    row_iota = lax.broadcasted_iota(jnp.int32, (rows, n_nodes), 0)
    col_iota = lax.broadcasted_iota(jnp.int32, (rows, n_nodes), 1)
    tgt = jnp.full((rows, n_nodes), -1, jnp.int32)                                # -1 never matches
    for i in range(batch):                                                       # SMEM scalar reads
        u_i = user_ref[i]
        p_i = pos_ref[i] + num_users
        n_i = neg_ref[i] + num_users
        tgt = jnp.where(row_iota == i, u_i, tgt)
        tgt = jnp.where(row_iota == batch + i, p_i, tgt)
        tgt = jnp.where(row_iota == 2 * batch + i, n_i, tgt)
    onehot = (col_iota == tgt).astype(jnp.float32)                               # (3B, N)

    g = jnp.dot(onehot, table, preferred_element_type=jnp.float32)               # (3B, 4D)

    ego_u = g[0:batch, 0:d]
    u_emb = g[0:batch, d:2 * d]
    u_v1 = g[0:batch, 2 * d:3 * d]
    u_v2 = g[0:batch, 3 * d:4 * d]
    ego_p = g[batch:2 * batch, 0:d]
    p_emb = g[batch:2 * batch, d:2 * d]
    p_v1 = g[batch:2 * batch, 2 * d:3 * d]
    p_v2 = g[batch:2 * batch, 3 * d:4 * d]
    ego_n = g[2 * batch:3 * batch, 0:d]
    n_emb = g[2 * batch:3 * batch, d:2 * d]

    # ---- BPR loss: mean softplus(neg - pos) -----------------------------------------
    pos_scores = jnp.sum(u_emb * p_emb, axis=-1, keepdims=True)                  # (B, 1)
    neg_scores = jnp.sum(u_emb * n_emb, axis=-1, keepdims=True)                  # (B, 1)
    bpr = jnp.mean(jnp.logaddexp(0.0, neg_scores - pos_scores), keepdims=True)   # (1, 1)

    # ---- reg loss: reg_lambda * (1/2) * ||ego||^2 / batch ---------------------------
    sq = (jnp.sum(ego_u * ego_u, keepdims=True)
          + jnp.sum(ego_p * ego_p, keepdims=True)
          + jnp.sum(ego_n * ego_n, keepdims=True))                               # (1, 1)
    reg = (reg_lambda * 0.5 / float(batch)) * sq

    # ---- InfoNCE between the two augmented views ------------------------------------
    inv_t = 1.0 / temperature

    def infonce(v1, v2):
        n1 = v1 * lax.rsqrt(jnp.sum(v1 * v1, axis=-1, keepdims=True) + 1e-12)
        n2 = v2 * lax.rsqrt(jnp.sum(v2 * v2, axis=-1, keepdims=True) + 1e-12)
        pos = jnp.sum(n1 * n2, axis=-1, keepdims=True) * inv_t                   # (B, 1)
        ttl = lax.dot_general(n1, n2, (((1,), (1,)), ((), ())),
                              preferred_element_type=jnp.float32) * inv_t        # (B, B)
        m = jnp.max(ttl, axis=-1, keepdims=True)
        lse = m + jnp.log(jnp.sum(jnp.exp(ttl - m), axis=-1, keepdims=True))
        return jnp.mean(lse - pos, keepdims=True)                                # (1, 1)

    ssl = ssl_lambda * (infonce(u_v1, u_v2) + infonce(p_v1, p_v2))

    # ---- pack the three losses into one full (8, 128) vreg (unmasked store) ---------
    sub = lax.broadcasted_iota(jnp.int32, (8, 128), 0)
    lane = lax.broadcasted_iota(jnp.int32, (8, 128), 1)
    packed = jnp.where((sub == 0) & (lane == 0), bpr, 0.0)
    packed = packed + jnp.where((sub == 0) & (lane == 1), reg, 0.0)
    packed = packed + jnp.where((sub == 0) & (lane == 2), ssl, 0.0)
    out_ref[...] = packed


# --------------------------------- wrapper -------------------------------------------
def sgl_forward(user_weight, item_weight, graph, sub_graph_1, sub_graph_2,
                user, positive, negative):
    user = user.astype(jnp.int32)
    positive = positive.astype(jnp.int32)
    negative = negative.astype(jnp.int32)

    vmem = pl.BlockSpec(memory_space=pltpu.MemorySpace.VMEM)
    smem = pl.BlockSpec(memory_space=pltpu.MemorySpace.SMEM)

    out = pl.pallas_call(
        functools.partial(sgl_fused_kernel,
                          num_users=NUM_USERS,
                          num_layers=GCN_LAYERS,
                          reg_lambda=REG_LAMBDA,
                          ssl_lambda=SSL_LAMBDA,
                          temperature=TEMPERATURE),
        out_shape=jax.ShapeDtypeStruct((8, 128), jnp.float32),
        in_specs=[vmem, vmem, vmem, vmem, vmem, smem, smem, smem],
        out_specs=pl.BlockSpec(memory_space=pltpu.MemorySpace.VMEM),
    )(user_weight, item_weight, graph, sub_graph_1, sub_graph_2,
      user, positive, negative)

    return out[0, :3]   # [bpr_loss, reg_loss, ssl_loss]


# ------------------------------ synthetic data ----------------------------------------
def build_norm_adjacency(interactions):
    """Symmetric-normalized bipartite adjacency A_hat = D^-1/2 [[0,R],[R^T,0]] D^-1/2."""
    r = interactions.astype(jnp.float32)
    top = jnp.concatenate([jnp.zeros((NUM_USERS, NUM_USERS)), r], axis=1)
    bot = jnp.concatenate([r.T, jnp.zeros((NUM_ITEMS, NUM_ITEMS))], axis=1)
    adj = jnp.concatenate([top, bot], axis=0)
    deg = jnp.sum(adj, axis=1)
    d_inv_sqrt = jnp.where(deg > 0, 1.0 / jnp.sqrt(deg), 0.0)
    return (d_inv_sqrt[:, None] * adj) * d_inv_sqrt[None, :]


def xavier_uniform(key, shape, gain=1.0):
    fan_out, fan_in = shape
    bound = gain * (6.0 / (fan_in + fan_out)) ** 0.5
    return jax.random.uniform(key, shape, jnp.float32, minval=-bound, maxval=bound)


if __name__ == "__main__":
    key = jax.random.PRNGKey(0)
    k_u, k_i, k_r, k_d1, k_d2, k_bu, k_bp, k_bn = jax.random.split(key, 8)

    # parameters (deterministic xavier init, matching nn.init.xavier_uniform_ gain=1)
    user_weight = xavier_uniform(k_u, (NUM_USERS, EMB_DIM))
    item_weight = xavier_uniform(k_i, (NUM_ITEMS, EMB_DIM))

    # synthetic user-item interaction matrix + two edge-dropout augmented sub-graphs
    # TODO(synk): torch.sparse.mm operates on a true sparse adjacency; it is densified here
    # for the small synthetic graph.
    interactions = (jax.random.uniform(k_r, (NUM_USERS, NUM_ITEMS)) < 0.3).astype(jnp.float32)
    keep1 = (jax.random.uniform(k_d1, (NUM_USERS, NUM_ITEMS)) < 0.8).astype(jnp.float32)
    keep2 = (jax.random.uniform(k_d2, (NUM_USERS, NUM_ITEMS)) < 0.8).astype(jnp.float32)
    graph = build_norm_adjacency(interactions)
    sub_graph_1 = build_norm_adjacency(interactions * keep1)
    sub_graph_2 = build_norm_adjacency(interactions * keep2)

    # sampled (user, positive item, negative item) batch
    user = jax.random.randint(k_bu, (BATCH,), 0, NUM_USERS)
    positive = jax.random.randint(k_bp, (BATCH,), 0, NUM_ITEMS)
    negative = jax.random.randint(k_bn, (BATCH,), 0, NUM_ITEMS)

    losses = jax.jit(sgl_forward)(user_weight, item_weight, graph,
                                  sub_graph_1, sub_graph_2, user, positive, negative)
    losses = jax.block_until_ready(losses)

    # pure-JAX reference check of the fused kernel
    def ref_forward():
        emb0 = jnp.concatenate([user_weight, item_weight], axis=0)

        def prop(adj):
            e, acc = emb0, emb0
            for _ in range(GCN_LAYERS):
                e = adj @ e
                acc = acc + e
            return acc / (GCN_LAYERS + 1)

        eg, e1, e2 = prop(graph), prop(sub_graph_1), prop(sub_graph_2)
        u_e, p_e, n_e = eg[user], eg[NUM_USERS + positive], eg[NUM_USERS + negative]
        bpr = jnp.mean(jnp.logaddexp(0.0, jnp.sum(u_e * n_e, -1) - jnp.sum(u_e * p_e, -1)))
        reg = REG_LAMBDA * 0.5 * (jnp.sum(user_weight[user] ** 2)
                                  + jnp.sum(item_weight[positive] ** 2)
                                  + jnp.sum(item_weight[negative] ** 2)) / BATCH

        def nce(v1, v2):
            n1 = v1 / jnp.sqrt(jnp.sum(v1 * v1, -1, keepdims=True) + 1e-12)
            n2 = v2 / jnp.sqrt(jnp.sum(v2 * v2, -1, keepdims=True) + 1e-12)
            pos = jnp.sum(n1 * n2, -1) / TEMPERATURE
            ttl = (n1 @ n2.T) / TEMPERATURE
            return jnp.mean(jax.scipy.special.logsumexp(ttl, axis=-1) - pos)

        ssl = SSL_LAMBDA * (nce(e1[user], e2[user])
                            + nce(e1[NUM_USERS + positive], e2[NUM_USERS + positive]))
        return [bpr, reg, ssl]

    ref = ref_forward()
    assert bool(jnp.all(jnp.isfinite(losses)))
    for got, want in zip([losses[0], losses[1], losses[2]], ref):
        g_f, w_f = float(got), float(want)
        assert abs(g_f - w_f) < 5e-4 + 1e-3 * abs(w_f), (g_f, w_f)
    print("KERNEL_OK")
</pallas_src>

<mosaic_0001>
module attributes {stable_mosaic.version = 11 : i64} {
  func.func @sgl_fused_kernel(%arg0: memref<16x32xf32, #tpu.memory_space<vmem>>, %arg1: memref<16x32xf32, #tpu.memory_space<vmem>>, %arg2: memref<32x32xf32, #tpu.memory_space<vmem>>, %arg3: memref<32x32xf32, #tpu.memory_space<vmem>>, %arg4: memref<32x32xf32, #tpu.memory_space<vmem>>, %arg5: memref<8xi32, #tpu.memory_space<smem>>, %arg6: memref<8xi32, #tpu.memory_space<smem>>, %arg7: memref<8xi32, #tpu.memory_space<smem>>, %arg8: memref<8x128xf32, #tpu.memory_space<vmem>>) attributes {dimension_semantics = [], scalar_prefetch = 0 : i64, scratch_operands = 0 : i64, tpu.core_type = #tpu.core_type<tc>} {
    %c0 = arith.constant 0 : index
    %c0_0 = arith.constant 0 : index
    %0 = vector.load %arg0[%c0, %c0_0] : memref<16x32xf32, #tpu.memory_space<vmem>>, vector<16x32xf32>
    %c0_1 = arith.constant 0 : index
    %c0_2 = arith.constant 0 : index
    %1 = vector.load %arg1[%c0_1, %c0_2] : memref<16x32xf32, #tpu.memory_space<vmem>>, vector<16x32xf32>
    %2 = tpu.concatenate %0, %1 in 0 : vector<16x32xf32>, vector<16x32xf32> -> vector<32x32xf32>
    %c0_3 = arith.constant 0 : index
    %c0_4 = arith.constant 0 : index
    %3 = vector.load %arg2[%c0_3, %c0_4] : memref<32x32xf32, #tpu.memory_space<vmem>>, vector<32x32xf32>
    %c0_5 = arith.constant 0 : index
    %c0_6 = arith.constant 0 : index
    %4 = vector.load %arg3[%c0_5, %c0_6] : memref<32x32xf32, #tpu.memory_space<vmem>>, vector<32x32xf32>
    %c0_7 = arith.constant 0 : index
    %c0_8 = arith.constant 0 : index
    %5 = vector.load %arg4[%c0_7, %c0_8] : memref<32x32xf32, #tpu.memory_space<vmem>>, vector<32x32xf32>
    %6 = tpu.concatenate %3, %4, %5 in 0 : vector<32x32xf32>, vector<32x32xf32>, vector<32x32xf32> -> vector<96x32xf32>
    %cst = arith.constant dense<0.000000e+00> : vector<96x32xf32>
    %7 = tpu.matmul %6, %2, %cst {dimension_numbers = #tpu.dot_dimension_numbers<[1], [0], [0], [1], [0, 0, 1, 1], [], []>} : vector<96x32xf32>, vector<32x32xf32>, vector<96x32xf32> -> vector<96x32xf32>
    %8 = tpu.concatenate %2, %2, %2 in 0 : vector<32x32xf32>, vector<32x32xf32>, vector<32x32xf32> -> vector<96x32xf32>
    %9 = arith.addf %8, %7 : vector<96x32xf32>
    %10 = vector.extract_strided_slice %7 {offsets = [0, 0], sizes = [32, 32], strides = [1, 1]} : vector<96x32xf32> to vector<32x32xf32>
    %11 = vector.extract_strided_slice %7 {offsets = [32, 0], sizes = [32, 32], strides = [1, 1]} : vector<96x32xf32> to vector<32x32xf32>
    %12 = vector.extract_strided_slice %7 {offsets = [64, 0], sizes = [32, 32], strides = [1, 1]} : vector<96x32xf32> to vector<32x32xf32>
    %13 = tpu.concatenate %10, %11, %12 in 1 : vector<32x32xf32>, vector<32x32xf32>, vector<32x32xf32> -> vector<32x96xf32>
    %cst_9 = arith.constant dense<0.000000e+00> : vector<96x96xf32>
    %14 = tpu.matmul %6, %13, %cst_9 {dimension_numbers = #tpu.dot_dimension_numbers<[1], [0], [0], [1], [0, 0, 1, 1], [], []>} : vector<96x32xf32>, vector<32x96xf32>, vector<96x96xf32> -> vector<96x96xf32>
    %15 = vector.extract_strided_slice %14 {offsets = [0, 0], sizes = [32, 32], strides = [1, 1]} : vector<96x96xf32> to vector<32x32xf32>
    %16 = vector.extract_strided_slice %14 {offsets = [32, 32], sizes = [32, 32], strides = [1, 1]} : vector<96x96xf32> to vector<32x32xf32>
    %17 = vector.extract_strided_slice %14 {offsets = [64, 64], sizes = [32, 32], strides = [1, 1]} : vector<96x96xf32> to vector<32x32xf32>
    %18 = tpu.concatenate %15, %16, %17 in 0 : vector<32x32xf32>, vector<32x32xf32>, vector<32x32xf32> -> vector<96x32xf32>
    %19 = arith.addf %9, %18 : vector<96x32xf32>
    %cst_10 = arith.constant 0.333333343 : f32
    %20 = vector.broadcast %cst_10 : f32 to vector<96x32xf32>
    %21 = arith.mulf %19, %20 : vector<96x32xf32>
    %22 = vector.extract_strided_slice %21 {offsets = [0, 0], sizes = [32, 32], strides = [1, 1]} : vector<96x32xf32> to vector<32x32xf32>
    %23 = vector.extract_strided_slice %21 {offsets = [32, 0], sizes = [32, 32], strides = [1, 1]} : vector<96x32xf32> to vector<32x32xf32>
    %24 = vector.extract_strided_slice %21 {offsets = [64, 0], sizes = [32, 32], strides = [1, 1]} : vector<96x32xf32> to vector<32x32xf32>
    %25 = tpu.concatenate %2, %22, %23, %24 in 1 : vector<32x32xf32>, vector<32x32xf32>, vector<32x32xf32>, vector<32x32xf32> -> vector<32x128xf32>
    %26 = tpu.iota {dimensions = array<i32: 0>} : vector<24x32xi32>
    %27 = tpu.iota {dimensions = array<i32: 1>} : vector<24x32xi32>
    %c-1_i32 = arith.constant -1 : i32
    %28 = vector.broadcast %c-1_i32 : i32 to vector<24x32xi32>
    %c0_11 = arith.constant 0 : index
    %29 = memref.load %arg5[%c0_11] : memref<8xi32, #tpu.memory_space<smem>>
    %c0_12 = arith.constant 0 : index
    %30 = memref.load %arg6[%c0_12] : memref<8xi32, #tpu.memory_space<smem>>
    %c16_i32 = arith.constant 16 : i32
    %31 = arith.addi %30, %c16_i32 : i32
    %c0_13 = arith.constant 0 : index
    %32 = memref.load %arg7[%c0_13] : memref<8xi32, #tpu.memory_space<smem>>
    %c16_i32_14 = arith.constant 16 : i32
    %33 = arith.addi %32, %c16_i32_14 : i32
    %c0_i32 = arith.constant 0 : i32
    %34 = vector.broadcast %c0_i32 : i32 to vector<24x32xi32>
    %35 = arith.cmpi eq, %26, %34 : vector<24x32xi32>
    %36 = vector.broadcast %29 : i32 to vector<24x32xi32>
    %37 = arith.select %35, %36, %28 : vector<24x32xi1>, vector<24x32xi32>
    %c8_i32 = arith.constant 8 : i32
    %38 = vector.broadcast %c8_i32 : i32 to vector<24x32xi32>
    %39 = arith.cmpi eq, %26, %38 : vector<24x32xi32>
    %40 = vector.broadcast %31 : i32 to vector<24x32xi32>
    %41 = arith.select %39, %40, %37 : vector<24x32xi1>, vector<24x32xi32>
    %c16_i32_15 = arith.constant 16 : i32
    %42 = vector.broadcast %c16_i32_15 : i32 to vector<24x32xi32>
    %43 = arith.cmpi eq, %26, %42 : vector<24x32xi32>
    %44 = vector.broadcast %33 : i32 to vector<24x32xi32>
    %45 = arith.select %43, %44, %41 : vector<24x32xi1>, vector<24x32xi32>
    %c1 = arith.constant 1 : index
    %46 = memref.load %arg5[%c1] : memref<8xi32, #tpu.memory_space<smem>>
    %c1_16 = arith.constant 1 : index
    %47 = memref.load %arg6[%c1_16] : memref<8xi32, #tpu.memory_space<smem>>
    %c16_i32_17 = arith.constant 16 : i32
    %48 = arith.addi %47, %c16_i32_17 : i32
    %c1_18 = arith.constant 1 : index
    %49 = memref.load %arg7[%c1_18] : memref<8xi32, #tpu.memory_space<smem>>
    %c16_i32_19 = arith.constant 16 : i32
    %50 = arith.addi %49, %c16_i32_19 : i32
    %c1_i32 = arith.constant 1 : i32
    %51 = vector.broadcast %c1_i32 : i32 to vector<24x32xi32>
    %52 = arith.cmpi eq, %26, %51 : vector<24x32xi32>
    %53 = vector.broadcast %46 : i32 to vector<24x32xi32>
    %54 = arith.select %52, %53, %45 : vector<24x32xi1>, vector<24x32xi32>
    %c9_i32 = arith.constant 9 : i32
    %55 = vector.broadcast %c9_i32 : i32 to vector<24x32xi32>
    %56 = arith.cmpi eq, %26, %55 : vector<24x32xi32>
    %57 = vector.broadcast %48 : i32 to vector<24x32xi32>
    %58 = arith.select %56, %57, %54 : vector<24x32xi1>, vector<24x32xi32>
    %c17_i32 = arith.constant 17 : i32
    %59 = vector.broadcast %c17_i32 : i32 to vector<24x32xi32>
    %60 = arith.cmpi eq, %26, %59 : vector<24x32xi32>
    %61 = vector.broadcast %50 : i32 to vector<24x32xi32>
    %62 = arith.select %60, %61, %58 : vector<24x32xi1>, vector<24x32xi32>
    %c2 = arith.constant 2 : index
    %63 = memref.load %arg5[%c2] : memref<8xi32, #tpu.memory_space<smem>>
    %c2_20 = arith.constant 2 : index
    %64 = memref.load %arg6[%c2_20] : memref<8xi32, #tpu.memory_space<smem>>
    %c16_i32_21 = arith.constant 16 : i32
    %65 = arith.addi %64, %c16_i32_21 : i32
    %c2_22 = arith.constant 2 : index
    %66 = memref.load %arg7[%c2_22] : memref<8xi32, #tpu.memory_space<smem>>
    %c16_i32_23 = arith.constant 16 : i32
    %67 = arith.addi %66, %c16_i32_23 : i32
    %c2_i32 = arith.constant 2 : i32
    %68 = vector.broadcast %c2_i32 : i32 to vector<24x32xi32>
    %69 = arith.cmpi eq, %26, %68 : vector<24x32xi32>
    %70 = vector.broadcast %63 : i32 to vector<24x32xi32>
    %71 = arith.select %69, %70, %62 : vector<24x32xi1>, vector<24x32xi32>
    %c10_i32 = arith.constant 10 : i32
    %72 = vector.broadcast %c10_i32 : i32 to vector<24x32xi32>
    %73 = arith.cmpi eq, %26, %72 : vector<24x32xi32>
    %74 = vector.broadcast %65 : i32 to vector<24x32xi32>
    %75 = arith.select %73, %74, %71 : vector<24x32xi1>, vector<24x32xi32>
    %c18_i32 = arith.constant 18 : i32
    %76 = vector.broadcast %c18_i32 : i32 to vector<24x32xi32>
    %77 = arith.cmpi eq, %26, %76 : vector<24x32xi32>
    %78 = vector.broadcast %67 : i32 to vector<24x32xi32>
    %79 = arith.select %77, %78, %75 : vector<24x32xi1>, vector<24x32xi32>
    %c3 = arith.constant 3 : index
    %80 = memref.load %arg5[%c3] : memref<8xi32, #tpu.memory_space<smem>>
    %c3_24 = arith.constant 3 : index
    %81 = memref.load %arg6[%c3_24] : memref<8xi32, #tpu.memory_space<smem>>
    %c16_i32_25 = arith.constant 16 : i32
    %82 = arith.addi %81, %c16_i32_25 : i32
    %c3_26 = arith.constant 3 : index
    %83 = memref.load %arg7[%c3_26] : memref<8xi32, #tpu.memory_space<smem>>
    %c16_i32_27 = arith.constant 16 : i32
    %84 = arith.addi %83, %c16_i32_27 : i32
    %c3_i32 = arith.constant 3 : i32
    %85 = vector.broadcast %c3_i32 : i32 to vector<24x32xi32>
    %86 = arith.cmpi eq, %26, %85 : vector<24x32xi32>
    %87 = vector.broadcast %80 : i32 to vector<24x32xi32>
    %88 = arith.select %86, %87, %79 : vector<24x32xi1>, vector<24x32xi32>
    %c11_i32 = arith.constant 11 : i32
    %89 = vector.broadcast %c11_i32 : i32 to vector<24x32xi32>
    %90 = arith.cmpi eq, %26, %89 : vector<24x32xi32>
    %91 = vector.broadcast %82 : i32 to vector<24x32xi32>
    %92 = arith.select %90, %91, %88 : vector<24x32xi1>, vector<24x32xi32>
    %c19_i32 = arith.constant 19 : i32
    %93 = vector.broadcast %c19_i32 : i32 to vector<24x32xi32>
    %94 = arith.cmpi eq, %26, %93 : vector<24x32xi32>
    %95 = vector.broadcast %84 : i32 to vector<24x32xi32>
    %96 = arith.select %94, %95, %92 : vector<24x32xi1>, vector<24x32xi32>
    %c4 = arith.constant 4 : index
    %97 = memref.load %arg5[%c4] : memref<8xi32, #tpu.memory_space<smem>>
    %c4_28 = arith.constant 4 : index
    %98 = memref.load %arg6[%c4_28] : memref<8xi32, #tpu.memory_space<smem>>
    %c16_i32_29 = arith.constant 16 : i32
    %99 = arith.addi %98, %c16_i32_29 : i32
    %c4_30 = arith.constant 4 : index
    %100 = memref.load %arg7[%c4_30] : memref<8xi32, #tpu.memory_space<smem>>
    %c16_i32_31 = arith.constant 16 : i32
    %101 = arith.addi %100, %c16_i32_31 : i32
    %c4_i32 = arith.constant 4 : i32
    %102 = vector.broadcast %c4_i32 : i32 to vector<24x32xi32>
    %103 = arith.cmpi eq, %26, %102 : vector<24x32xi32>
    %104 = vector.broadcast %97 : i32 to vector<24x32xi32>
    %105 = arith.select %103, %104, %96 : vector<24x32xi1>, vector<24x32xi32>
    %c12_i32 = arith.constant 12 : i32
    %106 = vector.broadcast %c12_i32 : i32 to vector<24x32xi32>
    %107 = arith.cmpi eq, %26, %106 : vector<24x32xi32>
    %108 = vector.broadcast %99 : i32 to vector<24x32xi32>
    %109 = arith.select %107, %108, %105 : vector<24x32xi1>, vector<24x32xi32>
    %c20_i32 = arith.constant 20 : i32
    %110 = vector.broadcast %c20_i32 : i32 to vector<24x32xi32>
    %111 = arith.cmpi eq, %26, %110 : vector<24x32xi32>
    %112 = vector.broadcast %101 : i32 to vector<24x32xi32>
    %113 = arith.select %111, %112, %109 : vector<24x32xi1>, vector<24x32xi32>
    %c5 = arith.constant 5 : index
    %114 = memref.load %arg5[%c5] : memref<8xi32, #tpu.memory_space<smem>>
    %c5_32 = arith.constant 5 : index
    %115 = memref.load %arg6[%c5_32] : memref<8xi32, #tpu.memory_space<smem>>
    %c16_i32_33 = arith.constant 16 : i32
    %116 = arith.addi %115, %c16_i32_33 : i32
    %c5_34 = arith.constant 5 : index
    %117 = memref.load %arg7[%c5_34] : memref<8xi32, #tpu.memory_space<smem>>
    %c16_i32_35 = arith.constant 16 : i32
    %118 = arith.addi %117, %c16_i32_35 : i32
    %c5_i32 = arith.constant 5 : i32
    %119 = vector.broadcast %c5_i32 : i32 to vector<24x32xi32>
    %120 = arith.cmpi eq, %26, %119 : vector<24x32xi32>
    %121 = vector.broadcast %114 : i32 to vector<24x32xi32>
    %122 = arith.select %120, %121, %113 : vector<24x32xi1>, vector<24x32xi32>
    %c13_i32 = arith.constant 13 : i32
    %123 = vector.broadcast %c13_i32 : i32 to vector<24x32xi32>
    %124 = arith.cmpi eq, %26, %123 : vector<24x32xi32>
    %125 = vector.broadcast %116 : i32 to vector<24x32xi32>
    %126 = arith.select %124, %125, %122 : vector<24x32xi1>, vector<24x32xi32>
    %c21_i32 = arith.constant 21 : i32
    %127 = vector.broadcast %c21_i32 : i32 to vector<24x32xi32>
    %128 = arith.cmpi eq, %26, %127 : vector<24x32xi32>
    %129 = vector.broadcast %118 : i32 to vector<24x32xi32>
    %130 = arith.select %128, %129, %126 : vector<24x32xi1>, vector<24x32xi32>
    %c6 = arith.constant 6 : index
    %131 = memref.load %arg5[%c6] : memref<8xi32, #tpu.memory_space<smem>>
    %c6_36 = arith.constant 6 : index
    %132 = memref.load %arg6[%c6_36] : memref<8xi32, #tpu.memory_space<smem>>
    %c16_i32_37 = arith.constant 16 : i32
    %133 = arith.addi %132, %c16_i32_37 : i32
    %c6_38 = arith.constant 6 : index
    %134 = memref.load %arg7[%c6_38] : memref<8xi32, #tpu.memory_space<smem>>
    %c16_i32_39 = arith.constant 16 : i32
    %135 = arith.addi %134, %c16_i32_39 : i32
    %c6_i32 = arith.constant 6 : i32
    %136 = vector.broadcast %c6_i32 : i32 to vector<24x32xi32>
    %137 = arith.cmpi eq, %26, %136 : vector<24x32xi32>
    %138 = vector.broadcast %131 : i32 to vector<24x32xi32>
    %139 = arith.select %137, %138, %130 : vector<24x32xi1>, vector<24x32xi32>
    %c14_i32 = arith.constant 14 : i32
    %140 = vector.broadcast %c14_i32 : i32 to vector<24x32xi32>
    %141 = arith.cmpi eq, %26, %140 : vector<24x32xi32>
    %142 = vector.broadcast %133 : i32 to vector<24x32xi32>
    %143 = arith.select %141, %142, %139 : vector<24x32xi1>, vector<24x32xi32>
    %c22_i32 = arith.constant 22 : i32
    %144 = vector.broadcast %c22_i32 : i32 to vector<24x32xi32>
    %145 = arith.cmpi eq, %26, %144 : vector<24x32xi32>
    %146 = vector.broadcast %135 : i32 to vector<24x32xi32>
    %147 = arith.select %145, %146, %143 : vector<24x32xi1>, vector<24x32xi32>
    %c7 = arith.constant 7 : index
    %148 = memref.load %arg5[%c7] : memref<8xi32, #tpu.memory_space<smem>>
    %c7_40 = arith.constant 7 : index
    %149 = memref.load %arg6[%c7_40] : memref<8xi32, #tpu.memory_space<smem>>
    %c16_i32_41 = arith.constant 16 : i32
    %150 = arith.addi %149, %c16_i32_41 : i32
    %c7_42 = arith.constant 7 : index
    %151 = memref.load %arg7[%c7_42] : memref<8xi32, #tpu.memory_space<smem>>
    %c16_i32_43 = arith.constant 16 : i32
    %152 = arith.addi %151, %c16_i32_43 : i32
    %c7_i32 = arith.constant 7 : i32
    %153 = vector.broadcast %c7_i32 : i32 to vector<24x32xi32>
    %154 = arith.cmpi eq, %26, %153 : vector<24x32xi32>
    %155 = vector.broadcast %148 : i32 to vector<24x32xi32>
    %156 = arith.select %154, %155, %147 : vector<24x32xi1>, vector<24x32xi32>
    %c15_i32 = arith.constant 15 : i32
    %157 = vector.broadcast %c15_i32 : i32 to vector<24x32xi32>
    %158 = arith.cmpi eq, %26, %157 : vector<24x32xi32>
    %159 = vector.broadcast %150 : i32 to vector<24x32xi32>
    %160 = arith.select %158, %159, %156 : vector<24x32xi1>, vector<24x32xi32>
    %c23_i32 = arith.constant 23 : i32
    %161 = vector.broadcast %c23_i32 : i32 to vector<24x32xi32>
    %162 = arith.cmpi eq, %26, %161 : vector<24x32xi32>
    %163 = vector.broadcast %152 : i32 to vector<24x32xi32>
    %164 = arith.select %162, %163, %160 : vector<24x32xi1>, vector<24x32xi32>
    %165 = arith.cmpi eq, %27, %164 : vector<24x32xi32>
    %166 = arith.extui %165 : vector<24x32xi1> to vector<24x32xi32>
    %167 = arith.sitofp %166 : vector<24x32xi32> to vector<24x32xf32>
    %cst_44 = arith.constant dense<0.000000e+00> : vector<24x128xf32>
    %168 = tpu.matmul %167, %25, %cst_44 {dimension_numbers = #tpu.dot_dimension_numbers<[1], [0], [0], [1], [0, 0, 1, 1], [], []>} : vector<24x32xf32>, vector<32x128xf32>, vector<24x128xf32> -> vector<24x128xf32>
    %169 = vector.extract_strided_slice %168 {offsets = [0, 0], sizes = [8, 32], strides = [1, 1]} : vector<24x128xf32> to vector<8x32xf32>
    %170 = vector.extract_strided_slice %168 {offsets = [0, 32], sizes = [8, 32], strides = [1, 1]} : vector<24x128xf32> to vector<8x32xf32>
    %171 = vector.extract_strided_slice %168 {offsets = [0, 64], sizes = [8, 32], strides = [1, 1]} : vector<24x128xf32> to vector<8x32xf32>
    %172 = vector.extract_strided_slice %168 {offsets = [0, 96], sizes = [8, 32], strides = [1, 1]} : vector<24x128xf32> to vector<8x32xf32>
    %173 = vector.extract_strided_slice %168 {offsets = [8, 0], sizes = [8, 32], strides = [1, 1]} : vector<24x128xf32> to vector<8x32xf32>
    %174 = vector.extract_strided_slice %168 {offsets = [8, 32], sizes = [8, 32], strides = [1, 1]} : vector<24x128xf32> to vector<8x32xf32>
    %175 = vector.extract_strided_slice %168 {offsets = [8, 64], sizes = [8, 32], strides = [1, 1]} : vector<24x128xf32> to vector<8x32xf32>
    %176 = vector.extract_strided_slice %168 {offsets = [8, 96], sizes = [8, 32], strides = [1, 1]} : vector<24x128xf32> to vector<8x32xf32>
    %177 = vector.extract_strided_slice %168 {offsets = [16, 0], sizes = [8, 32], strides = [1, 1]} : vector<24x128xf32> to vector<8x32xf32>
    %178 = vector.extract_strided_slice %168 {offsets = [16, 32], sizes = [8, 32], strides = [1, 1]} : vector<24x128xf32> to vector<8x32xf32>
    %179 = arith.mulf %170, %174 : vector<8x32xf32>
    %cst_45 = arith.constant dense<0.000000e+00> : vector<8xf32>
    %180 = vector.multi_reduction <add>, %179, %cst_45 [1] : vector<8x32xf32> to vector<8xf32>
    %181 = vector.shape_cast %180 : vector<8xf32> to vector<8x1xf32>
    %182 = arith.mulf %170, %178 : vector<8x32xf32>
    %cst_46 = arith.constant dense<0.000000e+00> : vector<8xf32>
    %183 = vector.multi_reduction <add>, %182, %cst_46 [1] : vector<8x32xf32> to vector<8xf32>
    %184 = vector.shape_cast %183 : vector<8xf32> to vector<8x1xf32>
    %185 = arith.subf %184, %181 : vector<8x1xf32>
    %cst_47 = arith.constant 0.000000e+00 : f32
    %186 = vector.broadcast %cst_47 : f32 to vector<8x1xf32>
    %187 = arith.maximumf %186, %185 : vector<8x1xf32>
    %188 = vector.broadcast %cst_47 : f32 to vector<8x1xf32>
    %189 = arith.subf %188, %185 : vector<8x1xf32>
    %190 = arith.cmpf one, %189, %189 : vector<8x1xf32>
    %191 = vector.broadcast %cst_47 : f32 to vector<8x1xf32>
    %192 = arith.addf %191, %185 : vector<8x1xf32>
    %193 = math.absf %189 : vector<8x1xf32>
    %cst_48 = arith.constant 0.000000e+00 : f32
    %194 = vector.broadcast %cst_48 : f32 to vector<8x1xf32>
    %195 = arith.subf %194, %193 : vector<8x1xf32>
    %196 = math.exp %195 : vector<8x1xf32>
    %197 = math.log1p %196 : vector<8x1xf32>
    %198 = arith.addf %187, %197 : vector<8x1xf32>
    %199 = arith.select %190, %192, %198 : vector<8x1xi1>, vector<8x1xf32>
    %200 = vector.shape_cast %199 : vector<8x1xf32> to vector<1x8x1xf32>
    %cst_49 = arith.constant dense<0.000000e+00> : vector<1xf32>
    %201 = vector.multi_reduction <add>, %200, %cst_49 [1, 2] : vector<1x8x1xf32> to vector<1xf32>
    %202 = vector.shape_cast %201 : vector<1xf32> to vector<1x1x1xf32>
    %203 = vector.extract %202[0, 0, 0] : f32 from vector<1x1x1xf32>
    %204 = vector.broadcast %203 : f32 to vector<1x1xf32>
    %cst_50 = arith.constant 8.000000e+00 : f32
    %205 = vector.broadcast %cst_50 : f32 to vector<1x1xf32>
    %206 = arith.divf %204, %205 : vector<1x1xf32>
    %207 = arith.mulf %169, %169 : vector<8x32xf32>
    %208 = vector.shape_cast %207 : vector<8x32xf32> to vector<1x8x32xf32>
    %cst_51 = arith.constant dense<0.000000e+00> : vector<1xf32>
    %209 = vector.multi_reduction <add>, %208, %cst_51 [1, 2] : vector<1x8x32xf32> to vector<1xf32>
    %210 = vector.shape_cast %209 : vector<1xf32> to vector<1x1x1xf32>
    %211 = vector.extract %210[0, 0, 0] : f32 from vector<1x1x1xf32>
    %212 = vector.broadcast %211 : f32 to vector<1x1xf32>
    %213 = arith.mulf %173, %173 : vector<8x32xf32>
    %214 = vector.shape_cast %213 : vector<8x32xf32> to vector<1x8x32xf32>
    %cst_52 = arith.constant dense<0.000000e+00> : vector<1xf32>
    %215 = vector.multi_reduction <add>, %214, %cst_52 [1, 2] : vector<1x8x32xf32> to vector<1xf32>
    %216 = vector.shape_cast %215 : vector<1xf32> to vector<1x1x1xf32>
    %217 = vector.extract %216[0, 0, 0] : f32 from vector<1x1x1xf32>
    %218 = vector.broadcast %217 : f32 to vector<1x1xf32>
    %219 = arith.addf %212, %218 : vector<1x1xf32>
    %220 = arith.mulf %177, %177 : vector<8x32xf32>
    %221 = vector.shape_cast %220 : vector<8x32xf32> to vector<1x8x32xf32>
    %cst_53 = arith.constant dense<0.000000e+00> : vector<1xf32>
    %222 = vector.multi_reduction <add>, %221, %cst_53 [1, 2] : vector<1x8x32xf32> to vector<1xf32>
    %223 = vector.shape_cast %222 : vector<1xf32> to vector<1x1x1xf32>
    %224 = vector.extract %223[0, 0, 0] : f32 from vector<1x1x1xf32>
    %225 = vector.broadcast %224 : f32 to vector<1x1xf32>
    %226 = arith.addf %219, %225 : vector<1x1xf32>
    %cst_54 = arith.constant 6.250000e-06 : f32
    %227 = vector.broadcast %cst_54 : f32 to vector<1x1xf32>
    %228 = arith.mulf %227, %226 : vector<1x1xf32>
    %229 = arith.mulf %171, %171 : vector<8x32xf32>
    %cst_55 = arith.constant dense<0.000000e+00> : vector<8xf32>
    %230 = vector.multi_reduction <add>, %229, %cst_55 [1] : vector<8x32xf32> to vector<8xf32>
    %231 = vector.shape_cast %230 : vector<8xf32> to vector<8x1xf32>
    %cst_56 = arith.constant 9.99999996E-13 : f32
    %232 = vector.broadcast %cst_56 : f32 to vector<8x1xf32>
    %233 = arith.addf %231, %232 : vector<8x1xf32>
    %234 = math.rsqrt %233 : vector<8x1xf32>
    %235 = vector.broadcast %234 : vector<8x1xf32> to vector<8x32xf32>
    %236 = arith.mulf %171, %235 : vector<8x32xf32>
    %237 = arith.mulf %172, %172 : vector<8x32xf32>
    %cst_57 = arith.constant dense<0.000000e+00> : vector<8xf32>
    %238 = vector.multi_reduction <add>, %237, %cst_57 [1] : vector<8x32xf32> to vector<8xf32>
    %239 = vector.shape_cast %238 : vector<8xf32> to vector<8x1xf32>
    %cst_58 = arith.constant 9.99999996E-13 : f32
    %240 = vector.broadcast %cst_58 : f32 to vector<8x1xf32>
    %241 = arith.addf %239, %240 : vector<8x1xf32>
    %242 = math.rsqrt %241 : vector<8x1xf32>
    %243 = vector.broadcast %242 : vector<8x1xf32> to vector<8x32xf32>
    %244 = arith.mulf %172, %243 : vector<8x32xf32>
    %245 = arith.mulf %236, %244 : vector<8x32xf32>
    %cst_59 = arith.constant dense<0.000000e+00> : vector<8xf32>
    %246 = vector.multi_reduction <add>, %245, %cst_59 [1] : vector<8x32xf32> to vector<8xf32>
    %247 = vector.shape_cast %246 : vector<8xf32> to vector<8x1xf32>
    %cst_60 = arith.constant 5.000000e+00 : f32
    %248 = vector.broadcast %cst_60 : f32 to vector<8x1xf32>
    %249 = arith.mulf %247, %248 : vector<8x1xf32>
    %cst_61 = arith.constant dense<0.000000e+00> : vector<8x8xf32>
    %250 = tpu.matmul %236, %244, %cst_61 {dimension_numbers = #tpu.dot_dimension_numbers<[1], [1], [0], [0], [0, 0, 1, 0], [], []>} : vector<8x32xf32>, vector<8x32xf32>, vector<8x8xf32> -> vector<8x8xf32>
    %cst_62 = arith.constant 5.000000e+00 : f32
    %251 = vector.broadcast %cst_62 : f32 to vector<8x8xf32>
    %252 = arith.mulf %250, %251 : vector<8x8xf32>
    %cst_63 = arith.constant dense<0xFF800000> : vector<8xf32>
    %253 = vector.multi_reduction <maximumf>, %252, %cst_63 [1] : vector<8x8xf32> to vector<8xf32>
    %254 = vector.shape_cast %253 : vector<8xf32> to vector<8x1xf32>
    %255 = vector.broadcast %254 : vector<8x1xf32> to vector<8x8xf32>
    %256 = arith.subf %252, %255 : vector<8x8xf32>
    %257 = math.exp %256 : vector<8x8xf32>
    %cst_64 = arith.constant dense<0.000000e+00> : vector<8xf32>
    %258 = vector.multi_reduction <add>, %257, %cst_64 [1] : vector<8x8xf32> to vector<8xf32>
    %259 = vector.shape_cast %258 : vector<8xf32> to vector<8x1xf32>
    %260 = math.log %259 : vector<8x1xf32>
    %261 = arith.addf %254, %260 : vector<8x1xf32>
    %262 = arith.subf %261, %249 : vector<8x1xf32>
    %263 = vector.shape_cast %262 : vector<8x1xf32> to vector<1x8x1xf32>
    %cst_65 = arith.constant dense<0.000000e+00> : vector<1xf32>
    %264 = vector.multi_reduction <add>, %263, %cst_65 [1, 2] : vector<1x8x1xf32> to vector<1xf32>
    %265 = vector.shape_cast %264 : vector<1xf32> to vector<1x1x1xf32>
    %266 = vector.extract %265[0, 0, 0] : f32 from vector<1x1x1xf32>
    %267 = vector.broadcast %266 : f32 to vector<1x1xf32>
    %cst_66 = arith.constant 8.000000e+00 : f32
    %268 = vector.broadcast %cst_66 : f32 to vector<1x1xf32>
    %269 = arith.divf %267, %268 : vector<1x1xf32>
    %270 = arith.mulf %175, %175 : vector<8x32xf32>
    %cst_67 = arith.constant dense<0.000000e+00> : vector<8xf32>
    %271 = vector.multi_reduction <add>, %270, %cst_67 [1] : vector<8x32xf32> to vector<8xf32>
    %272 = vector.shape_cast %271 : vector<8xf32> to vector<8x1xf32>
    %cst_68 = arith.constant 9.99999996E-13 : f32
    %273 = vector.broadcast %cst_68 : f32 to vector<8x1xf32>
    %274 = arith.addf %272, %273 : vector<8x1xf32>
    %275 = math.rsqrt %274 : vector<8x1xf32>
    %276 = vector.broadcast %275 : vector<8x1xf32> to vector<8x32xf32>
    %277 = arith.mulf %175, %276 : vector<8x32xf32>
    %278 = arith.mulf %176, %176 : vector<8x32xf32>
    %cst_69 = arith.constant dense<0.000000e+00> : vector<8xf32>
    %279 = vector.multi_reduction <add>, %278, %cst_69 [1] : vector<8x32xf32> to vector<8xf32>
    %280 = vector.shape_cast %279 : vector<8xf32> to vector<8x1xf32>
    %cst_70 = arith.constant 9.99999996E-13 : f32
    %281 = vector.broadcast %cst_70 : f32 to vector<8x1xf32>
    %282 = arith.addf %280, %281 : vector<8x1xf32>
    %283 = math.rsqrt %282 : vector<8x1xf32>
    %284 = vector.broadcast %283 : vector<8x1xf32> to vector<8x32xf32>
    %285 = arith.mulf %176, %284 : vector<8x32xf32>
    %286 = arith.mulf %277, %285 : vector<8x32xf32>
    %cst_71 = arith.constant dense<0.000000e+00> : vector<8xf32>
    %287 = vector.multi_reduction <add>, %286, %cst_71 [1] : vector<8x32xf32> to vector<8xf32>
    %288 = vector.shape_cast %287 : vector<8xf32> to vector<8x1xf32>
    %cst_72 = arith.constant 5.000000e+00 : f32
    %289 = vector.broadcast %cst_72 : f32 to vector<8x1xf32>
    %290 = arith.mulf %288, %289 : vector<8x1xf32>
    %cst_73 = arith.constant dense<0.000000e+00> : vector<8x8xf32>
    %291 = tpu.matmul %277, %285, %cst_73 {dimension_numbers = #tpu.dot_dimension_numbers<[1], [1], [0], [0], [0, 0, 1, 0], [], []>} : vector<8x32xf32>, vector<8x32xf32>, vector<8x8xf32> -> vector<8x8xf32>
    %cst_74 = arith.constant 5.000000e+00 : f32
    %292 = vector.broadcast %cst_74 : f32 to vector<8x8xf32>
    %293 = arith.mulf %291, %292 : vector<8x8xf32>
    %cst_75 = arith.constant dense<0xFF800000> : vector<8xf32>
    %294 = vector.multi_reduction <maximumf>, %293, %cst_75 [1] : vector<8x8xf32> to vector<8xf32>
    %295 = vector.shape_cast %294 : vector<8xf32> to vector<8x1xf32>
    %296 = vector.broadcast %295 : vector<8x1xf32> to vector<8x8xf32>
    %297 = arith.subf %293, %296 : vector<8x8xf32>
    %298 = math.exp %297 : vector<8x8xf32>
    %cst_76 = arith.constant dense<0.000000e+00> : vector<8xf32>
    %299 = vector.multi_reduction <add>, %298, %cst_76 [1] : vector<8x8xf32> to vector<8xf32>
    %300 = vector.shape_cast %299 : vector<8xf32> to vector<8x1xf32>
    %301 = math.log %300 : vector<8x1xf32>
    %302 = arith.addf %295, %301 : vector<8x1xf32>
    %303 = arith.subf %302, %290 : vector<8x1xf32>
    %304 = vector.shape_cast %303 : vector<8x1xf32> to vector<1x8x1xf32>
    %cst_77 = arith.constant dense<0.000000e+00> : vector<1xf32>
    %305 = vector.multi_reduction <add>, %304, %cst_77 [1, 2] : vector<1x8x1xf32> to vector<1xf32>
    %306 = vector.shape_cast %305 : vector<1xf32> to vector<1x1x1xf32>
    %307 = vector.extract %306[0, 0, 0] : f32 from vector<1x1x1xf32>
    %308 = vector.broadcast %307 : f32 to vector<1x1xf32>
    %cst_78 = arith.constant 8.000000e+00 : f32
    %309 = vector.broadcast %cst_78 : f32 to vector<1x1xf32>
    %310 = arith.divf %308, %309 : vector<1x1xf32>
    %311 = arith.addf %269, %310 : vector<1x1xf32>
    %cst_79 = arith.constant 1.000000e-01 : f32
    %312 = vector.broadcast %cst_79 : f32 to vector<1x1xf32>
    %313 = arith.mulf %312, %311 : vector<1x1xf32>
    %314 = tpu.iota {dimensions = array<i32: 0>} : vector<8x128xi32>
    %315 = tpu.iota {dimensions = array<i32: 1>} : vector<8x128xi32>
    %c0_i32_80 = arith.constant 0 : i32
    %316 = vector.broadcast %c0_i32_80 : i32 to vector<8x128xi32>
    %317 = arith.cmpi eq, %314, %316 : vector<8x128xi32>
    %c0_i32_81 = arith.constant 0 : i32
    %318 = vector.broadcast %c0_i32_81 : i32 to vector<8x128xi32>
    %319 = arith.cmpi eq, %315, %318 : vector<8x128xi32>
    %320 = arith.andi %317, %319 : vector<8x128xi1>
    %cst_82 = arith.constant 0.000000e+00 : f32
    %321 = vector.shape_cast %206 : vector<1x1xf32> to vector<1x1xf32>
    %322 = vector.broadcast %321 : vector<1x1xf32> to vector<8x128xf32>
    %323 = vector.broadcast %cst_82 : f32 to vector<8x128xf32>
    %324 = arith.select %320, %322, %323 : vector<8x128xi1>, vector<8x128xf32>
    %c0_i32_83 = arith.constant 0 : i32
    %325 = vector.broadcast %c0_i32_83 : i32 to vector<8x128xi32>
    %326 = arith.cmpi eq, %314, %325 : vector<8x128xi32>
    %c1_i32_84 = arith.constant 1 : i32
    %327 = vector.broadcast %c1_i32_84 : i32 to vector<8x128xi32>
    %328 = arith.cmpi eq, %315, %327 : vector<8x128xi32>
    %329 = arith.andi %326, %328 : vector<8x128xi1>
    %cst_85 = arith.constant 0.000000e+00 : f32
    %330 = vector.shape_cast %228 : vector<1x1xf32> to vector<1x1xf32>
    %331 = vector.broadcast %330 : vector<1x1xf32> to vector<8x128xf32>
    %332 = vector.broadcast %cst_85 : f32 to vector<8x128xf32>
    %333 = arith.select %329, %331, %332 : vector<8x128xi1>, vector<8x128xf32>
    %334 = arith.addf %324, %333 : vector<8x128xf32>
    %c0_i32_86 = arith.constant 0 : i32
    %335 = vector.broadcast %c0_i32_86 : i32 to vector<8x128xi32>
    %336 = arith.cmpi eq, %314, %335 : vector<8x128xi32>
    %c2_i32_87 = arith.constant 2 : i32
    %337 = vector.broadcast %c2_i32_87 : i32 to vector<8x128xi32>
    %338 = arith.cmpi eq, %315, %337 : vector<8x128xi32>
    %339 = arith.andi %336, %338 : vector<8x128xi1>
    %cst_88 = arith.constant 0.000000e+00 : f32
    %340 = vector.shape_cast %313 : vector<1x1xf32> to vector<1x1xf32>
    %341 = vector.broadcast %340 : vector<1x1xf32> to vector<8x128xf32>
    %342 = vector.broadcast %cst_88 : f32 to vector<8x128xf32>
    %343 = arith.select %339, %341, %342 : vector<8x128xi1>, vector<8x128xf32>
    %344 = arith.addf %334, %343 : vector<8x128xf32>
    %c0_89 = arith.constant 0 : index
    %c0_90 = arith.constant 0 : index
    %345 = vector.load %arg8[%c0_89, %c0_90] : memref<8x128xf32, #tpu.memory_space<vmem>>, vector<8x128xf32>
    tpu.vector_store %arg8[%c0_89, %c0_90], %344 {strides = array<i32>} : memref<8x128xf32, #tpu.memory_space<vmem>>, vector<8x128xf32>,
    return
  }
}

</mosaic_0001>

<bundles_post_ra>
// kernel: sgl_forward.1
= control target key start
LH: loop header
LB: loop body
LE: loop exit
PB: predicated region body
PF: predicated region fallthrough
CT: control target
= control target key end

     0   :  { %13 = vsyncpa [#allocation3], 0  ;;  %s1876_s0 = inlined_call_operand.hbm [shape: f32[16,32], index: 0, kind: input, shape index: {}]   ;;  %s1877_s1 = inlined_call_operand.hbm [shape: f32[16,32], index: 1, kind: input, shape index: {}]   ;;  %s1878_s2 = inlined_call_operand.hbm [shape: f32[32,32], index: 2, kind: input, shape index: {}]   ;;  %s1879_s3 = inlined_call_operand.hbm [shape: f32[32,32], index: 3, kind: input, shape index: {}]   ;;  %s1880_s4 = inlined_call_operand.hbm [shape: f32[32,32], index: 4, kind: input, shape index: {}]   ;;  %s1881_s5 = inlined_call_operand.vmem [shape: s32[8], index: 5, kind: input, shape index: {}]   ;;  %s1882_s6 = inlined_call_operand.vmem [shape: s32[8], index: 6, kind: input, shape index: {}]   ;;  %s1883_s7 = inlined_call_operand.vmem [shape: s32[8], index: 7, kind: input, shape index: {}]   ;;  %s1884_s8 = inlined_call_operand.vmem [shape: f32[8,128], index: 8, kind: output, shape index: {}]  }
   0x1   :  { %14 = vsyncpa [#allocation6], 0 }
   0x2   :  { %15 = vsyncpa [#allocation9], 0 }
   0x3   :  { %16 = vsyncpa [#allocation4], 0 }
   0x4   :  { %17 = vsyncpa [#allocation13], 0  ;;  %s35_s29 = sshll.u32 %s1877_s1, 4  ;;  %s1387_s30 = smov [#allocation5]   ;;  %s36_s29 = int_to_ptr.hbm [resolvable:$true] %s35_s29 }
   0x5   :  { %s37_s9 = sshll.u32 %s1387_s30, 4  ;;  %s61_s12 = sshll.u32 %s1879_s3, 4  ;;  %s38_s9 = int_to_ptr.vmem [resolvable:$true] %s37_s9  ;;  %s62_s12 = int_to_ptr.hbm [resolvable:$true] %s61_s12 }
   0x6   :  { %s1388_s13 = smov 128   ;;  %s1389_s14 = smov 8  }
   0x7   :  { %43 = dma.hbm_to_vmem [thread:$0]  %s36_s29, 256, %s38_s9, [#allocation6], %s1388_s13, %s1388_s13, %s1389_s14  }
   0x8   :  { %s1390_s15 = smov [#allocation8]   ;;  %s97_s1 = sshll.u32 %s1882_s6, 4  ;;  %s98_s1 = int_to_ptr.vmem [resolvable:$true] %s97_s1 }
   0x9   :  { %s63_s16 = sshll.u32 %s1390_s15, 4  ;;  %s22_s20 = sshll.u32 %s1876_s0, 4  ;;  %s64_s16 = int_to_ptr.vmem [resolvable:$true] %s63_s16  ;;  %s23_s20 = int_to_ptr.hbm [resolvable:$true] %s22_s20 }
   0xa   :  { %69 = dma.hbm_to_vmem [thread:$0]  %s62_s12, 512, %s64_s16, [#allocation9], %s1388_s13, %s1388_s13, %s1389_s14  }
   0xb   :  { %s1391_s21 = smov [#allocation12]   ;;  %s1392_s22 = smov [#allocation2]  }
   0xc   :  { %100 = dma.vmem_to_smem %s98_s1, 16, %s1391_s21, [#allocation13]  }
   0xd   :  { %s24_s23 = sshll.u32 %s1392_s22, 4  ;;  %s48_s26 = sshll.u32 %s1878_s2, 4  ;;  %s25_s23 = int_to_ptr.vmem [resolvable:$true] %s24_s23  ;;  %s49_s26 = int_to_ptr.hbm [resolvable:$true] %s48_s26 }
   0xe   :  { %30 = dma.hbm_to_vmem [thread:$0]  %s23_s20, 256, %s25_s23, [#allocation3], %s1388_s13, %s1388_s13, %s1389_s14  }
   0xf   :  { %s74_s28 = sshll.u32 %s1880_s4, 4  ;;  %s1393_s0 = smov [#allocation7]   ;;  %s75_s28 = int_to_ptr.hbm [resolvable:$true] %s74_s28 }
  0x10   :  { %s50_s29 = sshll.u32 %s1393_s0, 4  ;;  %s1394_s30 = smov [#allocation10]   ;;  %s51_s29 = int_to_ptr.vmem [resolvable:$true] %s50_s29 }
  0x11   :  { %56 = dma.hbm_to_vmem [thread:$0]  %s49_s26, 512, %s51_s29, [#allocation6], %s1388_s13, %s1388_s13, %s1389_s14  }
  0x12   :  { %s76_s2 = sshll.u32 %s1394_s30, 4  ;;  %s88_s11 = sshll.u32 %s1881_s5, 4  ;;  %s77_s2 = int_to_ptr.vmem [resolvable:$true] %s76_s2  ;;  %s89_s11 = int_to_ptr.vmem [resolvable:$true] %s88_s11 }
  0x13   :  { %82 = dma.hbm_to_vmem [thread:$0]  %s75_s28, 512, %s77_s2, [#allocation9], %s1388_s13, %s1388_s13, %s1389_s14  }
  0x14   :  { %s106_s15 = sshll.u32 %s1883_s7, 4  ;;  %s1395_s16 = smov [#allocation11]   ;;  %s107_s15 = int_to_ptr.vmem [resolvable:$true] %s106_s15 }
  0x15   :  { %91 = dma.vmem_to_smem %s89_s11, 16, %s1395_s16, [#allocation4]  }
  0x16   :  { %s1396_s17 = smov [#allocation14]  }
  0x17   :  { %109 = dma.vmem_to_smem %s107_s15, 16, %s1396_s17, [#allocation13]  }
  0x18   :  { %1377 = dma.done.wait [#allocation3], 256  }
  0x19   :  { %1378 = vsyncadd [#allocation3], 4294967040 }
  0x1a   :  { %1379 = dma.done.wait [#allocation6], 768  }
  0x1b   :  { %1380 = vsyncadd [#allocation6], 4294966528 }
  0x1c   :  { %1381 = dma.done.wait [#allocation9], 1024  }
  0x1d   :  { %1382 = vsyncadd [#allocation9], 4294966272 }
  0x1e   :  { %1383 = dma.done.wait [#allocation4], 16  }
  0x1f   :  { %1384 = vsyncadd [#allocation4], 4294967280 }
  0x20   :  { %1385 = dma.done.wait [#allocation13], 32  }
  0x21   :  { %1386 = vsyncadd [#allocation13], 4294967264 }
  0x22   :  { %142 = sfence }
  0x23   :  { %v1486_v0 = vld [vmem:[#allocation5 + $0x8] sm:$0xff]  ;;  %v1488_v1 = vld [vmem:[#allocation5] sm:$0xff]  ;;  %v1492_v2 = vld [vmem:[#allocation2 + $0x8] sm:$0xff]  ;;  %vm159_vm0 = vcmask 261120   ;;  %s1397_s5 = smov 32   ;;  %s1398_s7 = smov 64  }
  0x24   :  { %208 = vmatpush.msra.mxu0 %v1486_v0  ;;  %1114 = vmatpush.msra.mxu3 %v1486_v0  ;;  %v1496_v3 = vld [vmem:[#allocation2] sm:$0xff]  ;;  %v1510_v6 = vld [vmem:[#allocation7 + $0x8] sm:$0xff]  ;;  %v1518_v8 = vld [vmem:[#allocation7 + $0x10] sm:$0xff]  ;;  %vm297_vm1 = vcmask 523264   ;;  %s1399_s13 = smov 96   ;;  %s478_s14 = sld [smem:[#allocation11]] }
  0x25   :  { %v1499_v4 = vld [vmem:[#allocation7] sm:$0xff]  ;;  %v1512_v7 = vld [vmem:[#allocation10 + $0x8] sm:$0xff]  ;;  %v1520_v9 = vld [vmem:[#allocation10 + $0x10] sm:$0xff]  ;;  %s1083_s18 = sld [smem:[#allocation11 + $0x1]]  ;;  %vm467_vm12 = vcmask 785408  }
  0x26   :  { %209 = vmatpush.msra.mxu0 %v1488_v1  ;;  %1115 = vmatpush.msra.mxu3 %v1488_v1  ;;  %v1502_v5 = vld [vmem:[#allocation10] sm:$0xff]  ;;  %v1526_v10 = vld [vmem:[#allocation7 + $0x18] sm:$0xff]  ;;  %v1538_v13 = vld [vmem:[#allocation8 + $0x8] sm:$0xff]  ;;  %s1086_s1 = sld [smem:[#allocation11 + $0x2]] }
  0x27   :  { %v1528_v11 = vld [vmem:[#allocation10 + $0x18] sm:$0xff]  ;;  %v1534_v12 = vld [vmem:[#allocation8] sm:$0xff]  ;;  %v1542_v14 = vld [vmem:[#allocation8 + $0x10] sm:$0xff]  ;;  %s1089_s3 = sld [smem:[#allocation11 + $0x3]] }
  0x28   :  { %210 = vmatpush.msra.mxu0 %v1492_v2  ;;  %1116 = vmatpush.msra.mxu3 %v1492_v2  ;;  %v1546_v15 = vld [vmem:[#allocation8 + $0x18] sm:$0xff]  ;;  %s479_s19 = sld [smem:[#allocation12]] }
  0x29   :  { %s1092_s20 = sld [smem:[#allocation11 + $0x4]] }
  0x2a   :  { %211 = vmatpush.msra.mxu0 %v1496_v3  ;;  %1117 = vmatpush.msra.mxu3 %v1496_v3  ;;  %s1667_s21 = sld [smem:[#allocation12 + $0x1]] }
  0x2b   :  { %1059 = vmatmul.msk.f32.vlgmr.msra.gmra.mxu0 %vm159_vm0, %v1499_v4  ;;  %1067 = vmatmul.msk.f32.vlgmr.msra.gmra.mxu3 %vm159_vm0, %v1502_v5  ;;  %s1670_s22 = sld [smem:[#allocation11 + $0x5]] }
  0x2c   :  { %s1672_s23 = sld [smem:[#allocation12 + $0x2]] }
  0x2d   :  { %s1675_s24 = sld [smem:[#allocation11 + $0x6]] }
  0x2e   :  { %s480_s25 = sadd.s32 16, %s479_s19  ;;  %s1680_s26 = sld [smem:[#allocation14]] }
  0x2f   :  { %s1682_s6 = sld [smem:[#allocation12 + $0x3]] }
  0x30   :  { %s506_s27 = sadd.s32 16, %s1667_s21  ;;  %s1687_s28 = sld [smem:[#allocation14 + $0x1]] }
  0x31   :  { %s1689_s0 = sld [smem:[#allocation12 + $0x4]] }
  0x32   :  { %s1693_s29 = sld [smem:[#allocation11 + $0x7]]  ;;  %s532_s30 = sadd.s32 16, %s1672_s23 }
  0x33   :  { %1060 = vmatmul.msk.f32.gmra.mxu0 %vm159_vm0, %v1510_v6  ;;  %1068 = vmatmul.msk.f32.gmra.mxu3 %vm159_vm0, %v1512_v7  ;;  %s1697_s2 = sld [smem:[#allocation14 + $0x2]] }
  0x34   :  { %s1701_s9 = sld [smem:[#allocation12 + $0x5]]  ;;  %s482_s10 = sadd.s32 16, %s1680_s26 }
  0x35   :  { %s558_s11 = sadd.s32 16, %s1682_s6  ;;  %s1713_s4 = sld [smem:[#allocation14 + $0x3]] }
  0x36   :  { %s1719_s12 = sld [smem:[#allocation12 + $0x6]]  ;;  %s508_s15 = sadd.s32 16, %s1687_s28 }
  0x37   :  { %s584_s16 = sadd.s32 16, %s1689_s0  ;;  %s1732_s17 = sld [smem:[#allocation14 + $0x4]] }
  0x38   :  { %s1760_s21 = sld [smem:[#allocation14 + $0x6]] }
  0x3b   :  { %1061 = vmatmul.msk.f32.gmra.mxu0 %vm159_vm0, %v1518_v8  ;;  %1069 = vmatmul.msk.f32.gmra.mxu3 %vm159_vm0, %v1520_v9  ;;  %s560_s19 = sadd.s32 16, %s1713_s4 }
  0x3e   :  { %s638_s26 = sadd.s32 16, %s1760_s21 }
  0x43   :  { %1062 = vmatmul.msk.f32.gmra.mxu0 %vm159_vm0, %v1526_v10  ;;  %1070 = vmatmul.msk.f32.gmra.mxu3 %vm159_vm0, %v1528_v11 }
  0x4b   :  { %1063 = vmatmul.msk.f32.gmra.mxu0 %vm159_vm0, %v1534_v12 }
  0x53   :  { %1064 = vmatmul.msk.f32.gmra.mxu0 %vm159_vm0, %v1538_v13 }
  0x5b   :  { %1065 = vmatmul.msk.f32.gmra.mxu0 %vm159_vm0, %v1542_v14 }
  0x63   :  { %1066 = vmatmul.msk.f32.gmra.mxu0 %vm159_vm0, %v1546_v15 }
  0xa8   :  { %v1550_v16 = vpop.f32.mrf.mxu0 }
  0xae   :  { %v1560_v21 = vpop.f32.mrf.mxu3 }
  0xb0   :  { %v1552_v17 = vpop.f32.mrf.mxu0 }
  0xb6   :  { %v1566_v24 = vpop.f32.mrf.mxu3 }
  0xb7   :  { %v1164_v26 = vpack.i.bf16 %v1560_v21, %v1566_v24 }
  0xb8   :  { %v1554_v18 = vpop.f32.mrf.mxu0 }
  0xbe   :  { %v1574_v27 = vpop.f32.mrf.mxu3 }
  0xc0   :  { %v1556_v19 = vpop.f32.mrf.mxu0 }
  0xc1   :  { %v252_v63 = vadd.f32 %v1556_v19, %v1486_v0 }
  0xc6   :  { %v1581_v30 = vpop.f32.mrf.mxu3 }
  0xc7   :  { %v1154_v31 = vpack.i.bf16 %v1574_v27, %v1581_v30 }
  0xc8   :  { %v1558_v20 = vpop.f32.mrf.mxu0 }
  0xd0   :  { %v1562_v22 = vpop.f32.mrf.mxu0 }
  0xd1   :  { %v1159_v23 = vpack.i.bf16 %v1558_v20, %v1562_v22 }
  0xd3   :  { %1160 = vrot.lane.b32.xlu1 %v1159_v23, %s1397_s5 }
  0xd8   :  { %v1569_v25 = vpop.f32.mrf.mxu0 }
  0xdb   :  { %1165 = vrot.lane.b32.xlu1 %v1164_v26, %s1398_s7  ;;  %v259_v26 = vadd.f32 %v1574_v27, %v1488_v1 }
  0xe0   :  { %v1576_v28 = vpop.f32.mrf.mxu0 }
  0xe1   :  { %v1149_v29 = vpack.i.bf16 %v1569_v25, %v1576_v28 }
  0xe3   :  { %1150 = vrot.lane.b32.xlu0 %v1149_v29, %s1397_s5 }
  0xeb   :  { %1155 = vrot.lane.b32.xlu0 %v1154_v31, %s1398_s7 }
 0x145   :  { %v1161_v32 = vpop.permute.xlu1 %1160 }
 0x146   :  { %v1162_v40 = vunpack.i.l.bf16 %v1161_v32  ;;  %v1163_v44 = vunpack.i.h.bf16 %v1161_v32 }
 0x148   :  { %v294_v48 = vsel %vm159_vm0, %v1552_v17, %v1162_v40  ;;  %v293_v50 = vsel %vm159_vm0, %v1550_v16, %v1163_v44  ;;  %v255_v44 = vadd.f32 %v1569_v25, %v1488_v1 }
 0x14d   :  { %v1166_v35 = vpop.permute.xlu1 %1165 }
 0x14e   :  { %v1167_v42 = vunpack.i.l.bf16 %v1166_v35  ;;  %v1168_v46 = vunpack.i.h.bf16 %v1166_v35 }
 0x150   :  { %v299_v49 = vsel %vm297_vm1, %v294_v48, %v1167_v42  ;;  %v298_v51 = vsel %vm297_vm1, %v293_v50, %v1168_v46 }
 0x155   :  { %v1151_v33 = vpop.permute.xlu0 %1150 }
 0x156   :  { %v1152_v34 = vunpack.i.l.bf16 %v1151_v33  ;;  %v1153_v36 = vunpack.i.h.bf16 %v1151_v33 }
 0x158   :  { %v296_v41 = vsel %vm159_vm0, %v1556_v19, %v1152_v34  ;;  %v295_v45 = vsel %vm159_vm0, %v1554_v18, %v1153_v36  ;;  %v254_v36 = vadd.f32 %v1562_v22, %v1492_v2 }
 0x15d   :  { %v1156_v37 = vpop.permute.xlu0 %1155 }
 0x15e   :  { %v1158_v38 = vunpack.i.h.bf16 %v1156_v37  ;;  %v1157_v39 = vunpack.i.l.bf16 %v1156_v37  ;;  %v253_v37 = vadd.f32 %v1558_v20, %v1496_v3  ;;  %v257_v20 = vadd.f32 %v1560_v21, %v1496_v3 }
 0x160   :  { %v301_v43 = vsel %vm297_vm1, %v296_v41, %v1157_v39  ;;  %v300_v47 = vsel %vm297_vm1, %v295_v45, %v1158_v38 }
 0x161   :  { %314 = vmatpush.msra.mxu1 %v301_v43  ;;  %1118 = vmatpush.msra.mxu2 %v301_v43  ;;  %v256_v43 = vadd.f32 %v1576_v28, %v1486_v0 }
 0x163   :  { %315 = vmatpush.msra.mxu1 %v300_v47  ;;  %1119 = vmatpush.msra.mxu2 %v300_v47 }
 0x165   :  { %316 = vmatpush.msra.mxu1 %v299_v49  ;;  %1120 = vmatpush.msra.mxu2 %v299_v49 }
 0x167   :  { %317 = vmatpush.msra.mxu1 %v298_v51  ;;  %1121 = vmatpush.msra.mxu2 %v298_v51  ;;  %v258_v51 = vadd.f32 %v1566_v24, %v1492_v2  ;;  %v486_v24 = vstv %s478_s14  ;;  %s1736_s14 = sld [smem:[#allocation12 + $0x7]] }
 0x168   :  { %1071 = vmatmul.msk.f32.vlgmr.msra.gmra.mxu1 %vm159_vm0, %v1499_v4  ;;  %1079 = vmatmul.msk.f32.vlgmr.msra.gmra.mxu2 %vm159_vm0, %v1502_v5  ;;  %v251_v4 = vadd.f32 %v1554_v18, %v1488_v1 }
 0x16d   :  { %s662_s23 = sadd.s32 16, %s1736_s14 }
 0x170   :  { %1072 = vmatmul.msk.f32.gmra.mxu1 %vm159_vm0, %v1510_v6  ;;  %1080 = vmatmul.msk.f32.gmra.mxu2 %vm159_vm0, %v1512_v7 }
 0x178   :  { %1073 = vmatmul.msk.f32.gmra.mxu1 %vm159_vm0, %v1518_v8  ;;  %1081 = vmatmul.msk.f32.gmra.mxu2 %vm159_vm0, %v1520_v9  ;;  %v250_v9 = vadd.f32 %v1552_v17, %v1492_v2  ;;  %v260_v17 = vadd.f32 %v1581_v30, %v1486_v0 }
 0x180   :  { %1074 = vmatmul.msk.f32.gmra.mxu1 %vm159_vm0, %v1526_v10  ;;  %1082 = vmatmul.msk.f32.gmra.mxu2 %vm159_vm0, %v1528_v11  ;;  %v249_v11 = vadd.f32 %v1550_v16, %v1496_v3 }
 0x188   :  { %1075 = vmatmul.msk.f32.gmra.mxu1 %vm159_vm0, %v1534_v12 }
 0x190   :  { %1076 = vmatmul.msk.f32.gmra.mxu1 %vm159_vm0, %v1538_v13 }
 0x198   :  { %1077 = vmatmul.msk.f32.gmra.mxu1 %vm159_vm0, %v1542_v14 }
 0x1a0   :  { %1078 = vmatmul.msk.f32.gmra.mxu1 %vm159_vm0, %v1546_v15 }
 0x1e5   :  { %v319_v52 = vpop.f32.mrf.mxu1 }
 0x1e6   :  { %v387_v14 = vadd.f32 %v319_v52, %v249_v11 }
 0x1e8   :  { %v399_v18 = vmul.f32 0.33333334, %v387_v14 }
 0x1eb   :  { %v343_v53 = vpop.f32.mrf.mxu2 }
 0x1ed   :  { %v322_v54 = vpop.f32.mrf.mxu1 }
 0x1ee   :  { %v388_v12 = vadd.f32 %v322_v54, %v250_v9 }
 0x1f0   :  { %v400_v15 = vmul.f32 0.33333334, %v388_v12 }
 0x1f2   :  { %v1174_v19 = vpack.i.bf16 %v399_v18, %v400_v15 }
 0x1f3   :  { %v346_v55 = vpop.f32.mrf.mxu2 }
 0x1f5   :  { %v325_v56 = vpop.f32.mrf.mxu1 }
 0x1f6   :  { %v389_v7 = vadd.f32 %v325_v56, %v251_v4  ;;  %v472_v56 = vlaneseq }
 0x1f8   :  { %v401_v10 = vmul.f32 0.33333334, %v389_v7  ;;  %v1661_v21 = vshrl.u32 %v472_v56, 7  ;;  %v493_v7 = vstv %s480_s25 }
 0x1fa   :  { %vm483_vm2 = vcmp.eq.s32.totalorder %v1661_v21, 0  ;;  %vm509_vm3 = vcmp.eq.s32.totalorder %v1661_v21, 1  ;;  %vm535_vm4 = vcmp.eq.s32.totalorder %v1661_v21, 2  ;;  %vm561_vm5 = vcmp.eq.s32.totalorder %v1661_v21, 3 }
 0x1fb   :  { %v349_v57 = vpop.f32.mrf.mxu2  ;;  %v1678_v4 = vadd.s32 8, %v1661_v21  ;;  %vm587_vm6 = vcmp.eq.s32.totalorder %v1661_v21, 4  ;;  %vm613_vm8 = vcmp.eq.s32.totalorder %v1661_v21, 5  ;;  %v1704_v18 = vadd.s32 16, %v1661_v21 }
 0x1fc   :  { %379 = vrot.lane.b32.xlu1 %v349_v57, %s1398_s7  ;;  %v487_v57 = vsel %vm483_vm2, %v486_v24, 4294967295  ;;  %vm639_vm10 = vcmp.eq.s32.totalorder %v1661_v21, 6  ;;  %vm665_vm15 = vcmp.eq.s32.totalorder %v1661_v21, 7 }
 0x1fd   :  { %v328_v58 = vpop.f32.mrf.mxu1  ;;  %vm491_vm7 = vcmp.eq.s32.totalorder %v1678_v4, 8  ;;  %vm517_vm9 = vcmp.eq.s32.totalorder %v1678_v4, 9  ;;  %vm543_vm11 = vcmp.eq.s32.totalorder %v1678_v4, 10  ;;  %vm499_vm13 = vcmp.eq.s32.totalorder %v1704_v18, 16 }
 0x1fe   :  { %v390_v5 = vadd.f32 %v328_v58, %v252_v63  ;;  %v512_v58 = vstv %s1083_s18  ;;  %v564_v63 = vstv %s1089_s3  ;;  %v495_v12 = vsel %vm491_vm7, %v493_v7, 4294967295  ;;  %s534_s18 = sadd.s32 16, %s1697_s2  ;;  %s1748_s3 = sld [smem:[#allocation14 + $0x5]] }
 0x1ff   :  { %vm569_vm14 = vcmp.eq.s32.totalorder %v1678_v4, 11 }
 0x200   :  { %v402_v8 = vmul.f32 0.33333334, %v390_v5 }
 0x202   :  { %v1169_v13 = vpack.i.bf16 %v401_v10, %v402_v8  ;;  %v616_v10 = vstv %s1670_s22  ;;  %s586_s22 = sadd.s32 16, %s1732_s17 }
 0x203   :  { %v352_v59 = vpop.f32.mrf.mxu2 }
 0x204   :  { %381 = vrot.lane.b32.xlu2 %v352_v59, %s1398_s7  ;;  %v513_v59 = vsel %vm509_vm3, %v512_v58, %v487_v57  ;;  %vm595_vm3 = vcmp.eq.s32.totalorder %v1678_v4, 12  ;;  %s612_s25 = sadd.s32 16, %s1748_s3 }
 0x205   :  { %v331_v60 = vpop.f32.mrf.mxu1 }
 0x206   :  { %359 = vrot.lane.b32.xlu1 %v331_v60, %s1399_s13  ;;  %v538_v60 = vstv %s1086_s1  ;;  %s610_s1 = sadd.s32 16, %s1701_s9 }
 0x20d   :  { %v334_v61 = vpop.f32.mrf.mxu1 }
 0x20e   :  { %361 = vrot.lane.b32.xlu2 %v334_v61, %s1399_s13 }
 0x215   :  { %v337_v62 = vpop.f32.mrf.mxu1 }
 0x216   :  { %363 = vrot.lane.b32.xlu0 %v337_v62, %s1399_s13  ;;  %v539_v62 = vsel %vm535_vm4, %v538_v60, %v513_v59  ;;  %vm525_vm4 = vcmp.eq.s32.totalorder %v1704_v18, 17 }
 0x217   :  { %v565_v5 = vsel %vm561_vm5, %v564_v63, %v539_v62  ;;  %vm551_vm5 = vcmp.eq.s32.totalorder %v1704_v18, 18 }
 0x21d   :  { %v340_v6 = vpop.f32.mrf.mxu1 }
 0x21e   :  { %377 = vrot.lane.b32.xlu0 %v346_v55, %s1398_s7  ;;  %365 = vrot.lane.b32.xlu2 %v340_v6, %s1399_s13  ;;  %v590_v6 = vstv %s1092_s20  ;;  %s636_s20 = sadd.s32 16, %s1719_s12 }
 0x21f   :  { %v591_v9 = vsel %vm587_vm6, %v590_v6, %v565_v5  ;;  %vm621_vm6 = vcmp.eq.s32.totalorder %v1678_v4, 13  ;;  %v649_v24 = vstv %s636_s20  ;;  %v675_v5 = vstv %s662_s23 }
 0x220   :  { %v1400_v6 = vmov 0.0  }
 0x226   :  { %1170 = vrot.lane.b32.xlu0 %v1169_v13, %s1397_s5  ;;  %375 = vrot.lane.b32.xlu2 %v343_v53, %s1398_s7  ;;  %v519_v13 = vstv %s506_s27 }
 0x22e   :  { %1175 = vrot.lane.b32.xlu0 %v1174_v19, %s1397_s5 }
 0x25e   :  { %v382_v23 = vpop.permute.xlu2 %381 }
 0x25f   :  { %v398_v16 = vadd.f32 %v382_v23, %v260_v17  ;;  %v617_v23 = vsel %vm613_vm8, %v616_v10, %v591_v9  ;;  %v642_v17 = vstv %s1675_s24  ;;  %vm647_vm8 = vcmp.eq.s32.totalorder %v1678_v4, 14  ;;  %s1775_s24 = sld [smem:[#allocation14 + $0x7]] }
 0x260   :  { %v630_v10 = vstv %s612_s25 }
 0x261   :  { %v410_v32 = vmul.f32 0.33333334, %v398_v16  ;;  %v545_v16 = vstv %s532_s30 }
 0x265   :  { %s664_s6 = sadd.s32 16, %s1775_s24 }
 0x268   :  { %v362_v35 = vpop.permute.xlu2 %361 }
 0x269   :  { %v392_v38 = vadd.f32 %v362_v35, %v254_v36  ;;  %v643_v36 = vsel %vm639_vm10, %v642_v17, %v617_v23  ;;  %vm603_vm10 = vcmp.eq.s32.totalorder %v1704_v18, 20 }
 0x26b   :  { %v404_v40 = vmul.f32 0.33333334, %v392_v38 }
 0x26e   :  { %v380_v29 = vpop.permute.xlu1 %379 }
 0x26f   :  { %v397_v31 = vadd.f32 %v380_v29, %v259_v26  ;;  %v521_v26 = vsel %vm517_vm9, %v519_v13, %v495_v12  ;;  %vm577_vm9 = vcmp.eq.s32.totalorder %v1704_v18, 19 }
 0x271   :  { %v409_v33 = vmul.f32 0.33333334, %v397_v31 }
 0x273   :  { %v1179_v34 = vpack.i.bf16 %v409_v33, %v410_v32  ;;  %v1722_v33 = vand.u32 127, %v472_v56 }
 0x275   :  { %1180 = vrot.lane.b32.xlu2 %v1179_v34, %s1399_s13  ;;  %v500_v34 = vstv %s482_s10 }
 0x278   :  { %v360_v30 = vpop.permute.xlu1 %359  ;;  %v366_v42 = vpop.permute.xlu2 %365 }
 0x279   :  { %v391_v39 = vadd.f32 %v360_v30, %v253_v37  ;;  %v394_v45 = vadd.f32 %v366_v42, %v256_v43  ;;  %v547_v37 = vsel %vm543_vm11, %v545_v16, %v521_v26  ;;  %vm673_vm11 = vcmp.eq.s32.totalorder %v1678_v4, 15 }
 0x27a   :  { %v656_v4 = vstv %s638_s26 }
 0x27b   :  { %v403_v27 = vmul.f32 0.33333334, %v391_v39  ;;  %v406_v47 = vmul.f32 0.33333334, %v394_v45  ;;  %v668_v39 = vstv %s1693_s29 }
 0x27d   :  { %v1189_v41 = vpack.i.bf16 %v403_v27, %v404_v40  ;;  %v503_v40 = vsel %vm499_vm13, %v500_v34, 4294967295  ;;  %v526_v27 = vstv %s508_s15  ;;  %vm655_vm13 = vcmp.eq.s32.totalorder %v1704_v18, 22 }
 0x280   :  { %v376_v49 = vpop.permute.xlu2 %375 }
 0x281   :  { %v395_v52 = vadd.f32 %v376_v49, %v257_v20 }
 0x283   :  { %v407_v54 = vmul.f32 0.33333334, %v395_v52 }
 0x288   :  { %v364_v22 = vpop.permute.xlu0 %363 }
 0x289   :  { %v393_v46 = vadd.f32 %v364_v22, %v255_v44  ;;  %v597_v44 = vstv %s584_s16 }
 0x28b   :  { %v405_v48 = vmul.f32 0.33333334, %v393_v46  ;;  %v669_v46 = vsel %vm665_vm15, %v668_v39, %v643_v36  ;;  %vm681_vm15 = vcmp.eq.s32.totalorder %v1704_v18, 23 }
 0x28c   :  { %vm686_vm7 = vcmp.eq.s32.totalorder %v1722_v33, %v669_v46 }
 0x28d   :  { %v1184_v50 = vpack.i.bf16 %v405_v48, %v406_v47  ;;  %v529_v47 = vsel %vm525_vm4, %v526_v27, %v503_v40  ;;  %v552_v48 = vstv %s534_s18  ;;  %v1104_v7 = vsel %vm686_vm7, 1.0, %v1400_v6 }
 0x28f   :  { %1185 = vrot.lane.b32.xlu1 %v1184_v50, %s1398_s7  ;;  %v623_v50 = vstv %s610_s1 }
 0x290   :  { %v378_v28 = vpop.permute.xlu0 %377 }
 0x291   :  { %v396_v53 = vadd.f32 %v378_v28, %v258_v51 }
 0x293   :  { %v408_v25 = vmul.f32 0.33333334, %v396_v53 }
 0x295   :  { %v1194_v55 = vpack.i.bf16 %v407_v54, %v408_v25  ;;  %v555_v54 = vsel %vm551_vm5, %v552_v48, %v529_v47  ;;  %v578_v25 = vstv %s560_s19 }
 0x296   :  { %v581_v60 = vsel %vm577_vm9, %v578_v25, %v555_v54 }
 0x297   :  { %1195 = vrot.lane.b32.xlu2 %v1194_v55, %s1399_s13  ;;  %1190 = vrot.lane.b32.xlu1 %v1189_v41, %s1398_s7 }
 0x298   :  { %v1171_v61 = vpop.permute.xlu0 %1170 }
 0x299   :  { %v1172_v8 = vunpack.i.l.bf16 %v1171_v61  ;;  %v1173_v11 = vunpack.i.h.bf16 %v1171_v61  ;;  %v604_v61 = vstv %s586_s22 }
 0x29a   :  { %v607_v9 = vsel %vm603_vm10, %v604_v61, %v581_v60 }
 0x29b   :  { %v462_v19 = vsel %vm159_vm0, %v1486_v0, %v1172_v8  ;;  %v461_v0 = vsel %vm159_vm0, %v1488_v1, %v1173_v11  ;;  %v571_v1 = vstv %s558_s11 }
 0x29c   :  { %v573_v43 = vsel %vm569_vm14, %v571_v1, %v547_v37 }
 0x29d   :  { %v599_v20 = vsel %vm595_vm3, %v597_v44, %v573_v43 }
 0x2a0   :  { %v1699_v14 = vpop.permute.xlu0 %1175 }
 0x2a1   :  { %v1178_v29 = vunpack.i.h.bf16 %v1699_v14  ;;  %v1177_v31 = vunpack.i.l.bf16 %v1699_v14  ;;  %v682_v14 = vstv %s664_s6 }
 0x2a3   :  { %v460_v52 = vsel %vm159_vm0, %v1492_v2, %v1177_v31  ;;  %v459_v28 = vsel %vm159_vm0, %v1496_v3, %v1178_v29  ;;  %v625_v2 = vsel %vm621_vm6, %v623_v50, %v599_v20 }
 0x2a4   :  { %v651_v63 = vsel %vm647_vm8, %v649_v24, %v625_v2 }
 0x2a5   :  { %v677_v11 = vsel %vm673_vm11, %v675_v5, %v651_v63 }
 0x2a6   :  { %vm687_vm14 = vcmp.eq.s32.totalorder %v1722_v33, %v677_v11 }
 0x2cf   :  { %v1181_v15 = vpop.permute.xlu2 %1180 }
 0x2d0   :  { %v1182_v32 = vunpack.i.l.bf16 %v1181_v15  ;;  %v1183_v45 = vunpack.i.h.bf16 %v1181_v15  ;;  %v1105_v15 = vsel %vm687_vm14, 1.0, %v1400_v6 }
 0x2f1   :  { %v1196_v51 = vpop.permute.xlu2 %1195 }
 0x2f2   :  { %v1198_v3 = vunpack.i.h.bf16 %v1196_v51  ;;  %v1197_v57 = vunpack.i.l.bf16 %v1196_v51 }
 0x301   :  { %v1186_v35 = vpop.permute.xlu1 %1185 }
 0x302   :  { %v1188_v38 = vunpack.i.h.bf16 %v1186_v35  ;;  %v1187_v30 = vunpack.i.l.bf16 %v1186_v35 }
 0x304   :  { %v466_v41 = vsel %vm297_vm1, %v462_v19, %v1187_v30  ;;  %v465_v42 = vsel %vm297_vm1, %v461_v0, %v1188_v38 }
 0x305   :  { %v471_v22 = vsel %vm467_vm12, %v466_v41, %v1182_v32  ;;  %v470_v49 = vsel %vm467_vm12, %v465_v42, %v1183_v45 }
 0x306   :  { %716 = vmatpush.msrb.mxu2 %v471_v22 }
 0x308   :  { %717 = vmatpush.msrb.mxu2 %v470_v49 }
 0x309   :  { %v1191_v53 = vpop.permute.xlu1 %1190 }
 0x30a   :  { %v1193_v55 = vunpack.i.h.bf16 %v1191_v53  ;;  %v1192_v56 = vunpack.i.l.bf16 %v1191_v53 }
 0x30c   :  { %v464_v58 = vsel %vm297_vm1, %v460_v52, %v1192_v56  ;;  %v463_v59 = vsel %vm297_vm1, %v459_v28, %v1193_v55  ;;  %vm629_vm1 = vcmp.eq.s32.totalorder %v1704_v18, 21 }
 0x30d   :  { %v469_v62 = vsel %vm467_vm12, %v464_v58, %v1197_v57  ;;  %v468_v8 = vsel %vm467_vm12, %v463_v59, %v1198_v3  ;;  %v633_v12 = vsel %vm629_vm1, %v630_v10, %v607_v9 }
 0x30e   :  { %718 = vmatpush.msrb.mxu2 %v469_v62  ;;  %v659_v13 = vsel %vm655_vm13, %v656_v4, %v633_v12 }
 0x30f   :  { %v685_v19 = vsel %vm681_vm15, %v682_v14, %v659_v13  ;;  %vm905_vm15 = vcmask 64512  }
 0x310   :  { %719 = vmatpush.msrb.mxu2 %v468_v8  ;;  %vm688_vm12 = vcmp.eq.s32.totalorder %v1722_v33, %v685_v19 }
 0x311   :  { %1107 = vmatmul.msk.f32.vlgmr.msrb.gmra.mxu2 %vm159_vm0, %v1104_v7  ;;  %v1106_v23 = vsel %vm688_vm12, 1.0, %v1400_v6 }
 0x319   :  { %1108 = vmatmul.msk.f32.gmra.mxu2 %vm159_vm0, %v1105_v15 }
 0x321   :  { %1109 = vmatmul.msk.f32.gmra.mxu2 %vm159_vm0, %v1106_v23 }
 0x394   :  { %v1798_v17 = vpop.f32.mrf.mxu2 }
 0x395   :  { %v1802_v26 = vmul.f32 %v1798_v17, %v1798_v17 }
 0x397   :  { %826 = vrot.lane.b32.xlu1 %v1802_v26, %s1398_s7  ;;  %844 = vrot.lane.b32.xlu0 %v1802_v26, %s1397_s5 }
 0x39c   :  { %v1808_v18 = vpop.f32.mrf.mxu2 }
 0x39d   :  { %v1812_v16 = vmul.f32 %v1808_v18, %v1808_v18  ;;  %v730_v11 = vmul.f32 %v1808_v18, %v1798_v17 }
 0x39f   :  { %932 = vrot.lane.b32.xlu0 %v1812_v16, %s1398_s7  ;;  %950 = vrot.lane.b32.xlu2 %v1812_v16, %s1397_s5 }
 0x3a4   :  { %v1829_v6 = vpop.f32.mrf.mxu2 }
 0x3a5   :  { %v738_v9 = vmul.f32 %v1829_v6, %v1798_v17 }
 0x3f9   :  { %v951_v29 = vpop.permute.xlu2 %950 }
 0x3fa   :  { %v953_v31 = vsel %vm159_vm0, %v951_v29, 0.0 }
 0x3fb   :  { %954 = vadd.xlane.f32.xlu0 %v953_v31  ;;  %v787_v31 = vsel %vm159_vm0, %v1802_v26, 0.0 }
 0x409   :  { %v827_v32 = vpop.permute.xlu1 %826  ;;  %v845_v0 = vpop.permute.xlu0 %844 }
 0x40a   :  { %v847_v34 = vsel %vm159_vm0, %v845_v0, 0.0  ;;  %v829_v35 = vsel %vm159_vm0, %v827_v32, 0.0 }
 0x40b   :  { %848 = vadd.xlane.f32.xlu1 %v847_v34  ;;  %830 = vadd.xlane.f32.xlu2 %v829_v35 }
 0x411   :  { %v933_v36 = vpop.permute.xlu0 %932 }
 0x412   :  { %v935_v37 = vsel %vm159_vm0, %v933_v36, 0.0 }
 0x413   :  { %936 = vadd.xlane.f32.xlu2 %v935_v37 }
 0x46e   :  { %v955_v1 = vpop.xlane.xlu0 %954 }
 0x46f   :  { %v956_v38 = vadd.f32 1e-12, %v955_v1 }
 0x471   :  { %1199 = vrsqrt.f32 %v956_v38  ;;  %vm963_vm4 = vweird.f32 %v956_v38 }
 0x477   :  { %v1200_v30 = vpop.eup %1199 }
 0x478   :  { %v958_v39 = vmul.f32 %v1200_v30, %v956_v38  ;;  %vm964_vm3 = vweird.f32 %v1200_v30 }
 0x479   :  { %vm965_vm5 = vmor %vm963_vm4, %vm964_vm3  ;;  %vm766_vm3 = vcmask 7168  }
 0x47a   :  { %v959_v40 = vmul.f32 %v1200_v30, %v958_v39 }
 0x47c   :  { %v960_v27 = vmul.f32 0.5, %v959_v40 }
 0x47e   :  { %v961_v41 = vsub.f32 1.5, %v960_v27  ;;  %v849_v42 = vpop.xlane.xlu1 %848  ;;  %v831_v43 = vpop.xlane.xlu2 %830 }
 0x47f   :  { %v850_v44 = vadd.f32 1e-12, %v849_v42  ;;  %v832_v45 = vadd.f32 1e-12, %v831_v43 }
 0x480   :  { %v962_v22 = vmul.f32 %v1200_v30, %v961_v41 }
 0x481   :  { %1201 = vrsqrt.f32 %v850_v44  ;;  %vm857_vm8 = vweird.f32 %v850_v44  ;;  %vm839_vm10 = vweird.f32 %v832_v45 }
 0x482   :  { %1203 = vrsqrt.f32 %v832_v45  ;;  %v966_v46 = vsel %vm965_vm5, %v1200_v30, %v962_v22  ;;  %vm1041_vm5 = vcmp.eq.s32.totalorder %v1722_v33, 1 }
 0x483   :  { %v967_v47 = vmul.f32 %v966_v46, %v1808_v18 }
 0x485   :  { %984 = vrot.lane.b32.xlu0 %v967_v47, %s1397_s5 }
 0x486   :  { %v937_v48 = vpop.xlane.xlu2 %936 }
 0x487   :  { %v1202_v49 = vpop.eup %1201  ;;  %v938_v20 = vadd.f32 1e-12, %v937_v48 }
 0x488   :  { %v1204_v50 = vpop.eup %1203  ;;  %v852_v51 = vmul.f32 %v1202_v49, %v850_v44  ;;  %vm858_vm6 = vweird.f32 %v1202_v49 }
 0x489   :  { %v834_v52 = vmul.f32 %v1204_v50, %v832_v45  ;;  %1205 = vrsqrt.f32 %v938_v20  ;;  %vm840_vm7 = vweird.f32 %v1204_v50  ;;  %vm859_vm9 = vmor %vm857_vm8, %vm858_vm6  ;;  %vm945_vm13 = vweird.f32 %v938_v20 }
 0x48a   :  { %v853_v28 = vmul.f32 %v1202_v49, %v852_v51  ;;  %vm841_vm11 = vmor %vm839_vm10, %vm840_vm7  ;;  %vm1038_vm6 = vcmp.eq.s32.totalorder %v1722_v33, 0  ;;  %vm1045_vm8 = vcmp.eq.s32.totalorder %v1722_v33, 2 }
 0x48b   :  { %v835_v53 = vmul.f32 %v1204_v50, %v834_v52  ;;  %vm1042_vm7 = vmand %vm483_vm2, %vm1041_vm5 }
 0x48c   :  { %v854_v54 = vmul.f32 0.5, %v853_v28  ;;  %vm1046_vm10 = vmand %vm483_vm2, %vm1045_vm8 }
 0x48d   :  { %v836_v25 = vmul.f32 0.5, %v835_v53 }
 0x48e   :  { %v855_v55 = vsub.f32 1.5, %v854_v54 }
 0x48f   :  { %v1206_v56 = vpop.eup %1205  ;;  %v837_v2 = vsub.f32 1.5, %v836_v25 }
 0x490   :  { %v940_v24 = vmul.f32 %v1206_v56, %v938_v20  ;;  %v856_v3 = vmul.f32 %v1202_v49, %v855_v55  ;;  %vm946_vm1 = vweird.f32 %v1206_v56 }
 0x491   :  { %v838_v57 = vmul.f32 %v1204_v50, %v837_v2  ;;  %vm947_vm14 = vmor %vm945_vm13, %vm946_vm1 }
 0x492   :  { %v941_v58 = vmul.f32 %v1206_v56, %v940_v24  ;;  %v860_v59 = vsel %vm859_vm9, %v1202_v49, %v856_v3  ;;  %vm1039_vm9 = vmand %vm483_vm2, %vm1038_vm6 }
 0x493   :  { %v861_v60 = vmul.f32 %v860_v59, %v1798_v17  ;;  %v842_v61 = vsel %vm841_vm11, %v1204_v50, %v838_v57  ;;  %v799_v59 = vsel %vm159_vm0, %v1812_v16, 0.0 }
 0x494   :  { %v942_v62 = vmul.f32 0.5, %v941_v58  ;;  %v843_v63 = vmul.f32 %v842_v61, %v1798_v17 }
 0x495   :  { %878 = vrot.lane.b32.xlu1 %v861_v60, %s1397_s5  ;;  %863 = vrot.lane.b32.xlu0 %v861_v60, %s1399_s13 }
 0x496   :  { %v943_v5 = vsub.f32 1.5, %v942_v62  ;;  %876 = vrot.lane.b32.xlu2 %v843_v63, %s1398_s7 }
 0x498   :  { %v944_v7 = vmul.f32 %v1206_v56, %v943_v5  ;;  %v811_v5 = vmul.f32 %v1829_v6, %v1829_v6 }
 0x49a   :  { %v948_v8 = vsel %vm947_vm14, %v1206_v56, %v944_v7  ;;  %v812_v7 = vsel %vm159_vm0, %v811_v5, 0.0 }
 0x49b   :  { %v949_v10 = vmul.f32 %v948_v8, %v1808_v18 }
 0x49d   :  { %982 = vrot.lane.b32.xlu1 %v949_v10, %s1398_s7  ;;  %740 = vrot.lane.b32.xlu0 %v738_v9, %s1399_s13 }
 0x49e   :  { %969 = vrot.lane.b32.xlu2 %v967_v47, %s1399_s13 }
 0x4a5   :  { %732 = vrot.lane.b32.xlu1 %v730_v11, %s1399_s13 }
 0x4f0   :  { %v877_v4 = vpop.permute.xlu2 %876 }
 0x4f7   :  { %v985_v12 = vpop.permute.xlu0 %984 }
 0x4f8   :  { %v970_v19 = vpop.permute.xlu2 %969 }
 0x4f9   :  { %v972_v23 = vmul.f32 %v970_v19, %v949_v10 }
 0x507   :  { %v879_v13 = vpop.permute.xlu1 %878  ;;  %v864_v14 = vpop.permute.xlu0 %863 }
 0x508   :  { %v866_v15 = vmul.f32 %v864_v14, %v843_v63  ;;  %1110 = vmatpush.xpose.msk.msrb.mxu3 %vm159_vm0, %v879_v13 }
 0x50a   :  { %868 = vrot.lane.b32.xlu0 %v866_v15, %s1398_s7 }
 0x50b   :  { %1111 = vmatmul.msk.f32.vlgmr.msrb.gmra.mxu3 %vm159_vm0, %v877_v4 }
 0x50c   :  { %1112 = vmatpush.xpose.msk.msra.mxu3 %vm159_vm0, %v985_v12 }
 0x50f   :  { %v983_v29 = vpop.permute.xlu1 %982  ;;  %v741_v35 = vpop.permute.xlu0 %740 }
 0x510   :  { %v743_v38 = vsel %vm159_vm0, %v741_v35, 0.0 }
 0x512   :  { %974 = vrot.lane.b32.xlu0 %v972_v23, %s1398_s7 }
 0x513   :  { %1113 = vmatmul.msk.f32.vlgmr.msra.gmra.mxu3 %vm159_vm0, %v983_v29 }
 0x517   :  { %v733_v17 = vpop.permute.xlu1 %732 }
 0x518   :  { %v735_v18 = vsel %vm159_vm0, %v733_v17, 0.0 }
 0x53c   :  { %736 = vadd.xlane.f32.xlu0 %v735_v18 }
 0x544   :  { %788 = vadd.xlane.f32.xlu0 %v787_v31 }
 0x57c   :  { %v869_v30 = vpop.permute.xlu0 %868 }
 0x57d   :  { %v871_v28 = vsel %vm159_vm0, %v869_v30, 0.0 }
 0x584   :  { %v975_v39 = vpop.permute.xlu0 %974 }
 0x585   :  { %v977_v55 = vsel %vm159_vm0, %v975_v39, 0.0 }
 0x58e   :  { %v901_v32 = vpop.f32.mrf.mxu3 }
 0x58f   :  { %v904_v0 = vmul.f32 5.0, %v901_v32 }
 0x591   :  { %v906_v34 = vsel %vm905_vm15, %v904_v0, -inf }
 0x592   :  { %907 = vmax.xlane.f32.xlu2 %v906_v34 }
 0x596   :  { %v1007_v36 = vpop.f32.mrf.mxu3 }
 0x597   :  { %v1010_v37 = vmul.f32 5.0, %v1007_v36 }
 0x599   :  { %v1011_v1 = vsel %vm905_vm15, %v1010_v37, -inf }
 0x59a   :  { %1012 = vmax.xlane.f32.xlu1 %v1011_v1  ;;  %744 = vadd.xlane.f32.xlu2 %v743_v38 }
 0x5af   :  { %v737_v41 = vpop.xlane.xlu0 %736 }
 0x5b7   :  { %v789_v29 = vpop.xlane.xlu0 %788 }
 0x5b8   :  { %v790_v31 = vrot.slane %v789_v29, 4 }
 0x5ba   :  { %v791_v34 = vadd.f32 %v790_v31, %v789_v29 }
 0x605   :  { %v908_v40 = vpop.xlane.xlu2 %907 }
 0x606   :  { %v909_v26 = vsub.f32 %v904_v0, %v908_v40 }
 0x608   :  { %v910_v27 = vmul.f32 1.442695, %v909_v26 }
 0x60a   :  { %1207 = vpow2.f32 %v910_v27 }
 0x60d   :  { %v1013_v42 = vpop.xlane.xlu1 %1012  ;;  %v745_v43 = vpop.xlane.xlu2 %744 }
 0x60e   :  { %v1014_v44 = vsub.f32 %v1010_v37, %v1013_v42  ;;  %v746_v45 = vsub.f32 %v745_v43, %v737_v41  ;;  %v792_v37 = vrot.slane %v791_v34, 2 }
 0x610   :  { %v1208_v22 = vpop.eup %1207  ;;  %v1015_v46 = vmul.f32 1.442695, %v1014_v44  ;;  %v748_v47 = vsub.f32 0.0, %v746_v45  ;;  %v747_v58 = vmax.f32 %v746_v45, 0.0 }
 0x611   :  { %v912_v48 = vsel %vm905_vm15, %v1208_v22, 0.0 }
 0x612   :  { %1209 = vpow2.f32 %v1015_v46  ;;  %v751_v49 = vand.u32 2147483647, %v748_v47  ;;  %913 = vadd.xlane.f32.xlu1 %v912_v48  ;;  %vm749_vm4 = vcmp.ne.f32.partialorder %v748_v47, %v748_v47 }
 0x614   :  { %v752_v20 = vsub.f32 0.0, %v751_v49 }
 0x616   :  { %v753_v50 = vmul.f32 1.442695, %v752_v20 }
 0x618   :  { %v1210_v51 = vpop.eup %1209  ;;  %1211 = vpow2.f32 %v753_v50 }
 0x619   :  { %v1017_v52 = vsel %vm905_vm15, %v1210_v51, 0.0 }
 0x61a   :  { %1018 = vadd.xlane.f32.xlu2 %v1017_v52  ;;  %872 = vadd.xlane.f32.xlu1 %v871_v28 }
 0x61e   :  { %v1212_v53 = vpop.eup %1211 }
 0x61f   :  { %v755_v54 = vadd.f32 1.0, %v1212_v53  ;;  %v758_v25 = vmul.f32 -0.5, %v1212_v53  ;;  %v761_v2 = vand.u32 2147483647, %v1212_v53 }
 0x621   :  { %1213 = vlog2.f32 %v755_v54  ;;  %v759_v56 = vadd.f32 1.0, %v758_v25  ;;  %vm762_vm12 = vcmp.lt.f32.partialorder %v761_v2, 0.0004427343 }
 0x622   :  { %978 = vadd.xlane.f32.xlu2 %v977_v55 }
 0x623   :  { %v760_v57 = vmul.f32 %v1212_v53, %v759_v56 }
 0x627   :  { %v1214_v24 = vpop.eup %1213 }
 0x628   :  { %v757_v3 = vmul.f32 0.6931472, %v1214_v24 }
 0x62a   :  { %800 = vadd.xlane.f32.xlu2 %v799_v59  ;;  %v763_v60 = vsel %vm762_vm12, %v760_v57, %v757_v3 }
 0x62b   :  { %v764_v61 = vadd.f32 %v763_v60, %v747_v58 }
 0x62d   :  { %v765_v62 = vsel %vm749_vm4, %v746_v45, %v764_v61 }
 0x62e   :  { %v767_v63 = vsel %vm766_vm3, %v765_v62, 0.0  ;;  %v1401_v62 = vmov 8.0  }
 0x62f   :  { %768 = vadd.xlane.f32.xlu1 %v767_v63 }
 0x637   :  { %813 = vadd.xlane.f32.xlu1 %v812_v7 }
 0x685   :  { %v914_v8 = vpop.xlane.xlu1 %913 }
 0x686   :  { %1215 = vlog2.f32 %v914_v8 }
 0x68c   :  { %v1216_v9 = vpop.eup %1215 }
 0x68d   :  { %v916_v16 = vmul.f32 0.6931472, %v1216_v9  ;;  %v1019_v10 = vpop.xlane.xlu2 %1018  ;;  %v873_v11 = vpop.xlane.xlu1 %872 }
 0x68e   :  { %1217 = vlog2.f32 %v1019_v10  ;;  %v874_v12 = vmul.f32 5.0, %v873_v11 }
 0x68f   :  { %v917_v4 = vadd.f32 %v916_v16, %v908_v40  ;;  %v793_v40 = vadd.f32 %v792_v37, %v791_v34  ;;  %1219 = vrcp.f32 %v1401_v62 }
 0x691   :  { %v918_v13 = vsub.f32 %v917_v4, %v874_v12 }
 0x693   :  { %v919_v14 = vsel %vm766_vm3, %v918_v13, 0.0 }
 0x694   :  { %v1218_v15 = vpop.eup %1217  ;;  %920 = vadd.xlane.f32.xlu0 %v919_v14 }
 0x695   :  { %v1021_v19 = vmul.f32 0.6931472, %v1218_v15  ;;  %v979_v23 = vpop.xlane.xlu2 %978  ;;  %v1220_v63 = vpop.eup %1219 }
 0x696   :  { %v980_v6 = vmul.f32 5.0, %v979_v23  ;;  %v779_v5 = vmul.f32 8.0, %v1220_v63  ;;  %vm783_vm0 = vweird.f32 %v1220_v63 }
 0x697   :  { %v1022_v17 = vadd.f32 %v1021_v19, %v1013_v42  ;;  %v794_v42 = vrot.slane %v793_v40, 1 }
 0x698   :  { %v780_v7 = vsub.f32 1.0, %v779_v5 }
 0x699   :  { %v1023_v18 = vsub.f32 %v1022_v17, %v980_v6  ;;  %v795_v48 = vadd.f32 %v794_v42, %v793_v40 }
 0x69a   :  { %v781_v8 = vmul.f32 %v1220_v63, %v780_v7 }
 0x69b   :  { %v1024_v32 = vsel %vm766_vm3, %v1023_v18, 0.0 }
 0x69c   :  { %1025 = vadd.xlane.f32.xlu2 %v1024_v32  ;;  %v782_v12 = vadd.f32 %v1220_v63, %v781_v8 }
 0x69d   :  { %v801_v0 = vpop.xlane.xlu2 %800 }
 0x69e   :  { %v802_v35 = vrot.slane %v801_v0, 4  ;;  %v784_v14 = vsel %vm783_vm0, %v1220_v63, %v782_v12 }
 0x6a0   :  { %v803_v36 = vadd.f32 %v802_v35, %v801_v0 }
 0x6a2   :  { %v769_v1 = vpop.xlane.xlu1 %768  ;;  %v804_v38 = vrot.slane %v803_v36, 2 }
 0x6a3   :  { %v770_v30 = vrot.slane %v769_v1, 4 }
 0x6a4   :  { %v805_v27 = vadd.f32 %v804_v38, %v803_v36 }
 0x6a5   :  { %v771_v39 = vadd.f32 %v770_v30, %v769_v1 }
 0x6a6   :  { %v806_v22 = vrot.slane %v805_v27, 1 }
 0x6a7   :  { %v772_v26 = vrot.slane %v771_v39, 2 }
 0x6a8   :  { %v807_v20 = vadd.f32 %v806_v22, %v805_v27 }
 0x6a9   :  { %v773_v41 = vadd.f32 %v772_v26, %v771_v39 }
 0x6aa   :  { %v814_v43 = vpop.xlane.xlu1 %813 }
 0x6ab   :  { %v815_v44 = vrot.slane %v814_v43, 4  ;;  %v774_v45 = vrot.slane %v773_v41, 1 }
 0x6ad   :  { %v816_v46 = vadd.f32 %v815_v44, %v814_v43  ;;  %v775_v47 = vadd.f32 %v774_v45, %v773_v41 }
 0x6af   :  { %v817_v49 = vrot.slane %v816_v46, 2  ;;  %1122 = vpush %v775_v47 }
 0x6b0   :  { %1124 = vpush %v795_v48 }
 0x6b1   :  { %v818_v50 = vadd.f32 %v817_v49, %v816_v46  ;;  %1126 = vpush %v807_v20 }
 0x6b3   :  { %v819_v51 = vrot.slane %v818_v50, 1 }
 0x6b5   :  { %v820_v52 = vadd.f32 %v819_v51, %v818_v50 }
 0x6b7   :  { %1128 = vpush %v820_v52 }
 0x6e0   :  { %s1123_s5 = spop %1122 }
 0x6e1   :  { %s1125_s7 = spop %1124  ;;  %v777_v13 = vstv %s1123_s5 }
 0x6e2   :  { %s1127_s13 = spop %1126  ;;  %v797_v9 = vstv %s1125_s7  ;;  %v785_v6 = vmul.f32 %v784_v14, %v777_v13 }
 0x6e3   :  { %v809_v16 = vstv %s1127_s13 }
 0x6e4   :  { %v810_v11 = vadd.f32 %v809_v16, %v797_v9  ;;  %v1040_v32 = vsel %vm1039_vm9, %v785_v6, 0.0 }
 0x6e8   :  { %s1129_s27 = spop %1128 }
 0x6e9   :  { %v822_v10 = vstv %s1129_s27 }
 0x6ea   :  { %v823_v4 = vadd.f32 %v822_v10, %v810_v11 }
 0x6ec   :  { %v824_v19 = vmul.f32 6.25e-06, %v823_v4 }
 0x6ee   :  { %v1043_v18 = vsel %vm1042_vm7, %v824_v19, 0.0 }
 0x6ef   :  { %v1044_v34 = vadd.f32 %v1043_v18, %v1040_v32 }
 0x707   :  { %v921_v28 = vpop.xlane.xlu0 %920 }
 0x708   :  { %v922_v53 = vrot.slane %v921_v28, 4 }
 0x70a   :  { %v923_v54 = vadd.f32 %v922_v53, %v921_v28 }
 0x70c   :  { %v924_v25 = vrot.slane %v923_v54, 2 }
 0x70e   :  { %v925_v55 = vadd.f32 %v924_v25, %v923_v54 }
 0x70f   :  { %v1026_v56 = vpop.xlane.xlu2 %1025 }
 0x710   :  { %v1027_v2 = vrot.slane %v1026_v56, 4  ;;  %v926_v24 = vrot.slane %v925_v55, 1 }
 0x712   :  { %v1028_v3 = vadd.f32 %v1027_v2, %v1026_v56  ;;  %v927_v57 = vadd.f32 %v926_v24, %v925_v55 }
 0x714   :  { %v1029_v58 = vrot.slane %v1028_v3, 2  ;;  %1130 = vpush %v927_v57 }
 0x716   :  { %v1030_v59 = vadd.f32 %v1029_v58, %v1028_v3 }
 0x718   :  { %v1031_v60 = vrot.slane %v1030_v59, 1 }
 0x71a   :  { %v1032_v61 = vadd.f32 %v1031_v60, %v1030_v59 }
 0x71c   :  { %1132 = vpush %v1032_v61 }
 0x745   :  { %s1131_s28 = spop %1130 }
 0x746   :  { %v929_v15 = vstv %s1131_s28 }
 0x747   :  { %v930_v29 = vmul.f32 %v929_v15, %v784_v14 }
 0x74d   :  { %s1133_s0 = spop %1132 }
 0x74e   :  { %v1034_v23 = vstv %s1133_s0 }
 0x74f   :  { %v1035_v17 = vmul.f32 %v1034_v23, %v784_v14 }
 0x751   :  { %v1036_v31 = vadd.f32 %v1035_v17, %v930_v29 }
 0x753   :  { %v1037_v0 = vmul.f32 0.1, %v1036_v31 }
 0x755   :  { %v1047_v35 = vsel %vm1046_vm10, %v1037_v0, 0.0 }
 0x756   :  { %v1048_v36 = vadd.f32 %v1047_v35, %v1044_v34 }
 0x758   :  { %1049 = vst [vmem:[%s1884_s8] sm:$0xff] %v1048_v36 }
 0x759   :  { %1054 = vsyncpa [#allocation3], 1 }
 0x75a   :  { %1055 = vsyncpa [#allocation6], 1 }
 0x75b   :  { %1056 = vsyncpa [#allocation9], 1 }
 0x75c   :  { %1057 = vsyncpa [#allocation4], 1 }
 0x75d   :  { %1058 = vsyncpa [#allocation13], 1 }

</bundles_post_ra>
